<compile_context>
chip_gen: v7x
topology: tpu7x:2x2x1
jax: 0.10.0
libtpu: 0.0.40
codegen_flags: <defaults>
</compile_context>

<pallas_src>
import functools

import jax
import jax.numpy as jnp
from jax.experimental import pallas as pl
from jax.experimental.pallas import tpu as pltpu


def seq2seq_lstm_kernel(src_ref,                                   # (Bb, T)
                        enc_wih_ref, enc_whh_ref, enc_b_ref,       # (1,4H) (H,4H) (1,4H)
                        dec_wih_ref, dec_whh_ref, dec_b_ref,       # (1,4H) (H,4H) (1,4H)
                        dec_wcomb_ref, dec_bcomb_ref,              # (H,4H) (1,4H)
                        fc_w_ref, fc_b_ref,                        # (1,H)  (1,1)
                        out_ref):                                  # (Bb, L)
    Bb, T = src_ref.shape
    H = enc_whh_ref.shape[0]
    L = out_ref.shape[1]

    # Host-side weight transform gives gate layout [f, i, o, g] with the g-gate
    # pre-activation scaled by 2 (tanh(x) == 2*sigmoid(2x) - 1).
    lane = jax.lax.broadcasted_iota(jnp.int32, (Bb, 4 * H), 1)
    g_mask = lane >= 3 * H

    def lstm_step(x_gates, h, c, whh):
        # Only the recurrent matmul (Bb,H)@(H,4H) is data-dependent.
        gates = x_gates + jnp.dot(h, whh, preferred_element_type=jnp.float32)
        s = jax.nn.sigmoid(gates)                      # single full-width EUP op
        act = jnp.where(g_mask, 2.0 * s - 1.0, s)      # g-gate tanh via sigmoid
        # Gate combine with 2 lane relayouts (was 3):
        a = act[:, :2 * H]                             # [f | i]  offset-0 slice (free)
        b = act[:, 2 * H:]                             # [o | g]  one lane rotate
        p = a * b                                      # [f*o | i*g]
        c_new = a[:, :H] * c + p[:, H:]                # f*c + i*g  (one lane rotate)
        h_new = b[:, :H] * jnp.tanh(c_new)             # o * tanh(c_new), H-wide tanh
        return h_new, c_new

    h = jnp.zeros((Bb, H), jnp.float32)
    c = jnp.zeros((Bb, H), jnp.float32)

    # ---------------- encoder ----------------
    src_all = src_ref[...]
    enc_wih, enc_whh, enc_b = enc_wih_ref[...], enc_whh_ref[...], enc_b_ref[...]
    # Input projections do not depend on (h, c): precompute all of them before the
    # serial loop (input_dim == 1 -> each is a VPU broadcast multiply, no MXU).
    enc_xgates = [src_all[:, t:t + 1] * enc_wih + enc_b for t in range(T)]
    for t in range(T):                                 # small static trip count -> unroll
        h, c = lstm_step(enc_xgates[t], h, c, enc_whh)

    # ---------------- decoder (autoregressive) ----------------
    dec_wih, dec_whh, dec_b = dec_wih_ref[...], dec_whh_ref[...], dec_b_ref[...]
    dec_wcomb, dec_bcomb = dec_wcomb_ref[...], dec_bcomb_ref[...]

    # Step 0 feeds the last source value.
    x_gates0 = src_all[:, T - 1:T] * dec_wih + dec_b
    h, c = lstm_step(x_gates0, h, c, dec_whh)
    hs = [h]
    # Steps 1..L-1 feed y = fc(h) back; that feedback is folded host-side into
    # (dec_wcomb, dec_bcomb), so each step is just matmul -> sigmoid -> combine.
    for _ in range(L - 1):
        h, c = lstm_step(dec_bcomb, h, c, dec_wcomb)
        hs.append(h)

    # ---------------- fc head (entirely off the recurrence) ----------------
    fc_w, fc_b = fc_w_ref[...], fc_b_ref[...]
    out_lane = jax.lax.broadcasted_iota(jnp.int32, (Bb, L), 1)
    out = jnp.zeros((Bb, L), jnp.float32)
    for t in range(L):
        y = jnp.sum(hs[t] * fc_w, axis=-1, keepdims=True) + fc_b   # (Bb, 1)
        out = jnp.where(out_lane == t, y, out)
    out_ref[...] = out.astype(out_ref.dtype)                       # single store


@functools.partial(jax.jit, static_argnames=("output_length",))
def waterlevel_forward(src, kparams, output_length):
    """src: (B, T, 1) float32, returns (B, output_length, 1). Inference mode."""
    B, T, D = src.shape
    assert D == 1
    L = output_length

    # Batch rows are independent LSTMs: block the batch so larger batches fill the
    # MXU M dimension and (via the parallel grid axis) both v7x TensorCores.
    block_b = min(256, ((B + 7) // 8) * 8)
    Bp = ((B + block_b - 1) // block_b) * block_b
    grid = (Bp // block_b,)

    src_bt = jnp.pad(src[:, :, 0].astype(jnp.float32), ((0, Bp - B), (0, 0)))  # (Bp, T)

    def full_spec(arr):   # whole (tiny) weight array resident every grid step
        return pl.BlockSpec(arr.shape, lambda i: (0,) * arr.ndim)

    weight_args = (kparams["enc_wih"], kparams["enc_whh"], kparams["enc_b"],
                   kparams["dec_wih"], kparams["dec_whh"], kparams["dec_b"],
                   kparams["dec_wcomb"], kparams["dec_bcomb"],
                   kparams["fc_w"], kparams["fc_b"])

    out_bl = pl.pallas_call(
        seq2seq_lstm_kernel,
        out_shape=jax.ShapeDtypeStruct((Bp, L), jnp.float32),
        grid=grid,
        in_specs=[pl.BlockSpec((block_b, T), lambda i: (i, 0))]
                 + [full_spec(w) for w in weight_args],
        out_specs=pl.BlockSpec((block_b, L), lambda i: (i, 0)),
        compiler_params=pltpu.CompilerParams(dimension_semantics=("parallel",)),
    )(src_bt, *weight_args)

    return out_bl[:B, :, None].astype(src.dtype)                   # (B, L, 1)


def init_params(key, input_dim, hidden_dim):
    """Deterministic init matching PyTorch shapes (LSTM weights stored transposed)."""
    k = 1.0 / jnp.sqrt(jnp.float32(hidden_dim))
    keys = jax.random.split(key, 10)

    def u(kk, shape):
        return jax.random.uniform(kk, shape, jnp.float32, -k, k)

    # PyTorch: weight_ih (4H, D), weight_hh (4H, H), bias_ih (4H,), bias_hh (4H,)
    enc_wih = u(keys[0], (4 * hidden_dim, input_dim)).T        # (1, 4H)
    enc_whh = u(keys[1], (4 * hidden_dim, hidden_dim)).T       # (H, 4H)
    enc_b = (u(keys[2], (4 * hidden_dim,)) + u(keys[3], (4 * hidden_dim,)))[None, :]
    dec_wih = u(keys[4], (4 * hidden_dim, input_dim)).T
    dec_whh = u(keys[5], (4 * hidden_dim, hidden_dim)).T
    dec_b = (u(keys[6], (4 * hidden_dim,)) + u(keys[7], (4 * hidden_dim,)))[None, :]
    fc_w = u(keys[8], (input_dim, hidden_dim))                 # (1, H)
    fc_b = u(keys[9], (input_dim,))[None, :]                   # (1, 1)

    return dict(enc_wih=enc_wih, enc_whh=enc_whh, enc_b=enc_b,
                dec_wih=dec_wih, dec_whh=dec_whh, dec_b=dec_b,
                fc_w=fc_w, fc_b=fc_b)


def prepare_kernel_params(params):
    """Host-side weight transforms for the kernel (all exact, math-preserving):
      1. gate reorder [i,f,g,o] -> [f,i,o,g];
      2. scale the g-gate pre-activation by 2 (tanh(x) == 2*sigmoid(2x) - 1);
      3. fold the decoder's fc feedback into its recurrent weights:
         x_gates = (h @ fc_w.T + fc_b) * W_ih + b = h @ (fc_w.T @ W_ih) + (fc_b*W_ih + b).
    """
    def transform(w):  # acts on the trailing 4H axis
        i, f, g, o = jnp.split(w, 4, axis=-1)
        return jnp.concatenate([f, i, o, 2.0 * g], axis=-1)

    enc_wih, enc_whh, enc_b = map(transform, (params["enc_wih"], params["enc_whh"],
                                              params["enc_b"]))
    dec_wih, dec_whh, dec_b = map(transform, (params["dec_wih"], params["dec_whh"],
                                              params["dec_b"]))
    fc_w, fc_b = params["fc_w"], params["fc_b"]

    dec_wcomb = dec_whh + fc_w.T @ dec_wih        # (H, 4H)
    dec_bcomb = dec_b + fc_b * dec_wih            # (1, 4H)

    return dict(enc_wih=enc_wih, enc_whh=enc_whh, enc_b=enc_b,
                dec_wih=dec_wih, dec_whh=dec_whh, dec_b=dec_b,
                dec_wcomb=dec_wcomb, dec_bcomb=dec_bcomb,
                fc_w=fc_w, fc_b=fc_b)


def _reference_forward(src, params, output_length):
    """Pure-JAX reference of the original module semantics (untransformed weights)."""
    B, T, D = src.shape
    H = params["enc_whh"].shape[0]

    def cell(x, h, c, wih, whh, b):
        g = x @ wih + h @ whh + b
        i = jax.nn.sigmoid(g[:, :H])
        f = jax.nn.sigmoid(g[:, H:2 * H])
        gg = jnp.tanh(g[:, 2 * H:3 * H])
        o = jax.nn.sigmoid(g[:, 3 * H:])
        c = f * c + i * gg
        return o * jnp.tanh(c), c

    h = jnp.zeros((B, H), jnp.float32)
    c = jnp.zeros((B, H), jnp.float32)
    for t in range(T):
        h, c = cell(src[:, t, :], h, c, params["enc_wih"], params["enc_whh"],
                    params["enc_b"])
    dec_in = src[:, -1, :]
    outs = []
    for _ in range(output_length):
        h, c = cell(dec_in, h, c, params["dec_wih"], params["dec_whh"],
                    params["dec_b"])
        y = h @ params["fc_w"].T + params["fc_b"]              # (B, 1)
        outs.append(y[:, None, :])
        dec_in = y
    return jnp.concatenate(outs, axis=1)


if __name__ == "__main__":
    INPUT_DIM = 1
    HIDDEN_DIM = 32       # 4H == 128: one step's gates fill exactly one f32 vreg
    OUTPUT_LENGTH = 4
    BATCH = 2
    SEQ = 8

    key = jax.random.PRNGKey(0)
    k_param, k_src = jax.random.split(key)
    params = init_params(k_param, INPUT_DIM, HIDDEN_DIM)
    kparams = prepare_kernel_params(params)
    src = jax.random.normal(k_src, (BATCH, SEQ, INPUT_DIM), jnp.float32)

    out = waterlevel_forward(src, kparams, output_length=OUTPUT_LENGTH)
    out = jax.block_until_ready(out)

    ref = _reference_forward(src, params, OUTPUT_LENGTH)
    assert out.shape == (BATCH, OUTPUT_LENGTH, INPUT_DIM)
    # tanh-via-sigmoid and the fc fold are mathematically exact; only fp rounding differs.
    assert jnp.allclose(out, ref, atol=1e-4, rtol=1e-4), \
        float(jnp.max(jnp.abs(out - ref)))

    print("KERNEL_OK")
</pallas_src>

<mosaic_0001>
module attributes {stable_mosaic.version = 11 : i64} {
  func.func @seq2seq_lstm_kernel(%arg0: i32, %arg1: memref<8x8xf32, #tpu.memory_space<vmem>>, %arg2: memref<1x128xf32, #tpu.memory_space<vmem>>, %arg3: memref<32x128xf32, #tpu.memory_space<vmem>>, %arg4: memref<1x128xf32, #tpu.memory_space<vmem>>, %arg5: memref<1x128xf32, #tpu.memory_space<vmem>>, %arg6: memref<32x128xf32, #tpu.memory_space<vmem>>, %arg7: memref<1x128xf32, #tpu.memory_space<vmem>>, %arg8: memref<32x128xf32, #tpu.memory_space<vmem>>, %arg9: memref<1x128xf32, #tpu.memory_space<vmem>>, %arg10: memref<1x32xf32, #tpu.memory_space<vmem>>, %arg11: memref<1x1xf32, #tpu.memory_space<vmem>>, %arg12: memref<8x4xf32, #tpu.memory_space<vmem>>) attributes {dimension_semantics = [#tpu.dimension_semantics<parallel>], iteration_bounds = array<i64: 1>, scalar_prefetch = 0 : i64, scratch_operands = 0 : i64, tpu.core_type = #tpu.core_type<tc>, window_params = [{transform_indices = @transform_0, window_bounds = array<i64: 8, 8>}, {pipeline_mode = #tpu.pipeline_mode<synchronous>, transform_indices = @transform_1, window_bounds = array<i64: 1, 128>}, {pipeline_mode = #tpu.pipeline_mode<synchronous>, transform_indices = @transform_2, window_bounds = array<i64: 32, 128>}, {pipeline_mode = #tpu.pipeline_mode<synchronous>, transform_indices = @transform_3, window_bounds = array<i64: 1, 128>}, {pipeline_mode = #tpu.pipeline_mode<synchronous>, transform_indices = @transform_4, window_bounds = array<i64: 1, 128>}, {pipeline_mode = #tpu.pipeline_mode<synchronous>, transform_indices = @transform_5, window_bounds = array<i64: 32, 128>}, {pipeline_mode = #tpu.pipeline_mode<synchronous>, transform_indices = @transform_6, window_bounds = array<i64: 1, 128>}, {pipeline_mode = #tpu.pipeline_mode<synchronous>, transform_indices = @transform_7, window_bounds = array<i64: 32, 128>}, {pipeline_mode = #tpu.pipeline_mode<synchronous>, transform_indices = @transform_8, window_bounds = array<i64: 1, 128>}, {pipeline_mode = #tpu.pipeline_mode<synchronous>, transform_indices = @transform_9, window_bounds = array<i64: 1, 32>}, {pipeline_mode = #tpu.pipeline_mode<synchronous>, transform_indices = @transform_10, window_bounds = array<i64: 1, 1>}, {transform_indices = @transform_11, window_bounds = array<i64: 8, 4>}]} {
    %0 = tpu.iota {dimensions = array<i32: 1>} : vector<8x128xi32>
    %c96_i32 = arith.constant 96 : i32
    %1 = vector.broadcast %c96_i32 : i32 to vector<8x128xi32>
    %2 = arith.cmpi sge, %0, %1 : vector<8x128xi32>
    %cst = arith.constant 0.000000e+00 : f32
    %3 = vector.broadcast %cst : f32 to vector<8x32xf32>
    %cst_0 = arith.constant 0.000000e+00 : f32
    %4 = vector.broadcast %cst_0 : f32 to vector<8x32xf32>
    %c0 = arith.constant 0 : index
    %c0_1 = arith.constant 0 : index
    %5 = vector.load %arg1[%c0, %c0_1] : memref<8x8xf32, #tpu.memory_space<vmem>>, vector<8x8xf32>
    %c0_2 = arith.constant 0 : index
    %c0_3 = arith.constant 0 : index
    %6 = vector.load %arg2[%c0_2, %c0_3] : memref<1x128xf32, #tpu.memory_space<vmem>>, vector<1x128xf32>
    %c0_4 = arith.constant 0 : index
    %c0_5 = arith.constant 0 : index
    %7 = vector.load %arg3[%c0_4, %c0_5] : memref<32x128xf32, #tpu.memory_space<vmem>>, vector<32x128xf32>
    %c0_6 = arith.constant 0 : index
    %c0_7 = arith.constant 0 : index
    %8 = vector.load %arg4[%c0_6, %c0_7] : memref<1x128xf32, #tpu.memory_space<vmem>>, vector<1x128xf32>
    %9 = vector.extract_strided_slice %5 {offsets = [0, 0], sizes = [8, 1], strides = [1, 1]} : vector<8x8xf32> to vector<8x1xf32>
    %10 = vector.broadcast %9 : vector<8x1xf32> to vector<8x128xf32>
    %11 = vector.broadcast %6 : vector<1x128xf32> to vector<8x128xf32>
    %12 = arith.mulf %10, %11 : vector<8x128xf32>
    %13 = vector.broadcast %8 : vector<1x128xf32> to vector<8x128xf32>
    %14 = arith.addf %12, %13 : vector<8x128xf32>
    %15 = vector.extract_strided_slice %5 {offsets = [0, 1], sizes = [8, 1], strides = [1, 1]} : vector<8x8xf32> to vector<8x1xf32>
    %16 = vector.broadcast %15 : vector<8x1xf32> to vector<8x128xf32>
    %17 = vector.broadcast %6 : vector<1x128xf32> to vector<8x128xf32>
    %18 = arith.mulf %16, %17 : vector<8x128xf32>
    %19 = vector.broadcast %8 : vector<1x128xf32> to vector<8x128xf32>
    %20 = arith.addf %18, %19 : vector<8x128xf32>
    %21 = vector.extract_strided_slice %5 {offsets = [0, 2], sizes = [8, 1], strides = [1, 1]} : vector<8x8xf32> to vector<8x1xf32>
    %22 = vector.broadcast %21 : vector<8x1xf32> to vector<8x128xf32>
    %23 = vector.broadcast %6 : vector<1x128xf32> to vector<8x128xf32>
    %24 = arith.mulf %22, %23 : vector<8x128xf32>
    %25 = vector.broadcast %8 : vector<1x128xf32> to vector<8x128xf32>
    %26 = arith.addf %24, %25 : vector<8x128xf32>
    %27 = vector.extract_strided_slice %5 {offsets = [0, 3], sizes = [8, 1], strides = [1, 1]} : vector<8x8xf32> to vector<8x1xf32>
    %28 = vector.broadcast %27 : vector<8x1xf32> to vector<8x128xf32>
    %29 = vector.broadcast %6 : vector<1x128xf32> to vector<8x128xf32>
    %30 = arith.mulf %28, %29 : vector<8x128xf32>
    %31 = vector.broadcast %8 : vector<1x128xf32> to vector<8x128xf32>
    %32 = arith.addf %30, %31 : vector<8x128xf32>
    %33 = vector.extract_strided_slice %5 {offsets = [0, 4], sizes = [8, 1], strides = [1, 1]} : vector<8x8xf32> to vector<8x1xf32>
    %34 = vector.broadcast %33 : vector<8x1xf32> to vector<8x128xf32>
    %35 = vector.broadcast %6 : vector<1x128xf32> to vector<8x128xf32>
    %36 = arith.mulf %34, %35 : vector<8x128xf32>
    %37 = vector.broadcast %8 : vector<1x128xf32> to vector<8x128xf32>
    %38 = arith.addf %36, %37 : vector<8x128xf32>
    %39 = vector.extract_strided_slice %5 {offsets = [0, 5], sizes = [8, 1], strides = [1, 1]} : vector<8x8xf32> to vector<8x1xf32>
    %40 = vector.broadcast %39 : vector<8x1xf32> to vector<8x128xf32>
    %41 = vector.broadcast %6 : vector<1x128xf32> to vector<8x128xf32>
    %42 = arith.mulf %40, %41 : vector<8x128xf32>
    %43 = vector.broadcast %8 : vector<1x128xf32> to vector<8x128xf32>
    %44 = arith.addf %42, %43 : vector<8x128xf32>
    %45 = vector.extract_strided_slice %5 {offsets = [0, 6], sizes = [8, 1], strides = [1, 1]} : vector<8x8xf32> to vector<8x1xf32>
    %46 = vector.broadcast %45 : vector<8x1xf32> to vector<8x128xf32>
    %47 = vector.broadcast %6 : vector<1x128xf32> to vector<8x128xf32>
    %48 = arith.mulf %46, %47 : vector<8x128xf32>
    %49 = vector.broadcast %8 : vector<1x128xf32> to vector<8x128xf32>
    %50 = arith.addf %48, %49 : vector<8x128xf32>
    %51 = vector.extract_strided_slice %5 {offsets = [0, 7], sizes = [8, 1], strides = [1, 1]} : vector<8x8xf32> to vector<8x1xf32>
    %52 = vector.broadcast %51 : vector<8x1xf32> to vector<8x128xf32>
    %53 = vector.broadcast %6 : vector<1x128xf32> to vector<8x128xf32>
    %54 = arith.mulf %52, %53 : vector<8x128xf32>
    %55 = vector.broadcast %8 : vector<1x128xf32> to vector<8x128xf32>
    %56 = arith.addf %54, %55 : vector<8x128xf32>
    %cst_8 = arith.constant dense<0.000000e+00> : vector<8x128xf32>
    %57 = tpu.matmul %3, %7, %cst_8 {dimension_numbers = #tpu.dot_dimension_numbers<[1], [0], [0], [1], [0, 0, 1, 1], [], []>} : vector<8x32xf32>, vector<32x128xf32>, vector<8x128xf32> -> vector<8x128xf32>
    %58 = arith.addf %14, %57 : vector<8x128xf32>
    %59 = arith.negf %58 : vector<8x128xf32>
    %60 = math.exp %59 : vector<8x128xf32>
    %cst_9 = arith.constant 1.000000e+00 : f32
    %61 = vector.broadcast %cst_9 : f32 to vector<8x128xf32>
    %62 = arith.addf %61, %60 : vector<8x128xf32>
    %63 = arith.divf %61, %62 : vector<8x128xf32>
    %cst_10 = arith.constant 2.000000e+00 : f32
    %64 = vector.broadcast %cst_10 : f32 to vector<8x128xf32>
    %65 = arith.mulf %64, %63 : vector<8x128xf32>
    %cst_11 = arith.constant 1.000000e+00 : f32
    %66 = vector.broadcast %cst_11 : f32 to vector<8x128xf32>
    %67 = arith.subf %65, %66 : vector<8x128xf32>
    %68 = arith.select %2, %67, %63 : vector<8x128xi1>, vector<8x128xf32>
    %69 = vector.extract_strided_slice %68 {offsets = [0, 0], sizes = [8, 64], strides = [1, 1]} : vector<8x128xf32> to vector<8x64xf32>
    %70 = vector.extract_strided_slice %68 {offsets = [0, 64], sizes = [8, 64], strides = [1, 1]} : vector<8x128xf32> to vector<8x64xf32>
    %71 = arith.mulf %69, %70 : vector<8x64xf32>
    %72 = vector.extract_strided_slice %69 {offsets = [0, 0], sizes = [8, 32], strides = [1, 1]} : vector<8x64xf32> to vector<8x32xf32>
    %73 = arith.mulf %72, %4 : vector<8x32xf32>
    %74 = vector.extract_strided_slice %71 {offsets = [0, 32], sizes = [8, 32], strides = [1, 1]} : vector<8x64xf32> to vector<8x32xf32>
    %75 = arith.addf %73, %74 : vector<8x32xf32>
    %76 = vector.extract_strided_slice %70 {offsets = [0, 0], sizes = [8, 32], strides = [1, 1]} : vector<8x64xf32> to vector<8x32xf32>
    %77 = math.tanh %75 : vector<8x32xf32>
    %78 = arith.mulf %76, %77 : vector<8x32xf32>
    %cst_12 = arith.constant dense<0.000000e+00> : vector<8x128xf32>
    %79 = tpu.matmul %78, %7, %cst_12 {dimension_numbers = #tpu.dot_dimension_numbers<[1], [0], [0], [1], [0, 0, 1, 1], [], []>} : vector<8x32xf32>, vector<32x128xf32>, vector<8x128xf32> -> vector<8x128xf32>
    %80 = arith.addf %20, %79 : vector<8x128xf32>
    %81 = arith.negf %80 : vector<8x128xf32>
    %82 = math.exp %81 : vector<8x128xf32>
    %cst_13 = arith.constant 1.000000e+00 : f32
    %83 = vector.broadcast %cst_13 : f32 to vector<8x128xf32>
    %84 = arith.addf %83, %82 : vector<8x128xf32>
    %85 = arith.divf %83, %84 : vector<8x128xf32>
    %cst_14 = arith.constant 2.000000e+00 : f32
    %86 = vector.broadcast %cst_14 : f32 to vector<8x128xf32>
    %87 = arith.mulf %86, %85 : vector<8x128xf32>
    %cst_15 = arith.constant 1.000000e+00 : f32
    %88 = vector.broadcast %cst_15 : f32 to vector<8x128xf32>
    %89 = arith.subf %87, %88 : vector<8x128xf32>
    %90 = arith.select %2, %89, %85 : vector<8x128xi1>, vector<8x128xf32>
    %91 = vector.extract_strided_slice %90 {offsets = [0, 0], sizes = [8, 64], strides = [1, 1]} : vector<8x128xf32> to vector<8x64xf32>
    %92 = vector.extract_strided_slice %90 {offsets = [0, 64], sizes = [8, 64], strides = [1, 1]} : vector<8x128xf32> to vector<8x64xf32>
    %93 = arith.mulf %91, %92 : vector<8x64xf32>
    %94 = vector.extract_strided_slice %91 {offsets = [0, 0], sizes = [8, 32], strides = [1, 1]} : vector<8x64xf32> to vector<8x32xf32>
    %95 = arith.mulf %94, %75 : vector<8x32xf32>
    %96 = vector.extract_strided_slice %93 {offsets = [0, 32], sizes = [8, 32], strides = [1, 1]} : vector<8x64xf32> to vector<8x32xf32>
    %97 = arith.addf %95, %96 : vector<8x32xf32>
    %98 = vector.extract_strided_slice %92 {offsets = [0, 0], sizes = [8, 32], strides = [1, 1]} : vector<8x64xf32> to vector<8x32xf32>
    %99 = math.tanh %97 : vector<8x32xf32>
    %100 = arith.mulf %98, %99 : vector<8x32xf32>
    %cst_16 = arith.constant dense<0.000000e+00> : vector<8x128xf32>
    %101 = tpu.matmul %100, %7, %cst_16 {dimension_numbers = #tpu.dot_dimension_numbers<[1], [0], [0], [1], [0, 0, 1, 1], [], []>} : vector<8x32xf32>, vector<32x128xf32>, vector<8x128xf32> -> vector<8x128xf32>
    %102 = arith.addf %26, %101 : vector<8x128xf32>
    %103 = arith.negf %102 : vector<8x128xf32>
    %104 = math.exp %103 : vector<8x128xf32>
    %cst_17 = arith.constant 1.000000e+00 : f32
    %105 = vector.broadcast %cst_17 : f32 to vector<8x128xf32>
    %106 = arith.addf %105, %104 : vector<8x128xf32>
    %107 = arith.divf %105, %106 : vector<8x128xf32>
    %cst_18 = arith.constant 2.000000e+00 : f32
    %108 = vector.broadcast %cst_18 : f32 to vector<8x128xf32>
    %109 = arith.mulf %108, %107 : vector<8x128xf32>
    %cst_19 = arith.constant 1.000000e+00 : f32
    %110 = vector.broadcast %cst_19 : f32 to vector<8x128xf32>
    %111 = arith.subf %109, %110 : vector<8x128xf32>
    %112 = arith.select %2, %111, %107 : vector<8x128xi1>, vector<8x128xf32>
    %113 = vector.extract_strided_slice %112 {offsets = [0, 0], sizes = [8, 64], strides = [1, 1]} : vector<8x128xf32> to vector<8x64xf32>
    %114 = vector.extract_strided_slice %112 {offsets = [0, 64], sizes = [8, 64], strides = [1, 1]} : vector<8x128xf32> to vector<8x64xf32>
    %115 = arith.mulf %113, %114 : vector<8x64xf32>
    %116 = vector.extract_strided_slice %113 {offsets = [0, 0], sizes = [8, 32], strides = [1, 1]} : vector<8x64xf32> to vector<8x32xf32>
    %117 = arith.mulf %116, %97 : vector<8x32xf32>
    %118 = vector.extract_strided_slice %115 {offsets = [0, 32], sizes = [8, 32], strides = [1, 1]} : vector<8x64xf32> to vector<8x32xf32>
    %119 = arith.addf %117, %118 : vector<8x32xf32>
    %120 = vector.extract_strided_slice %114 {offsets = [0, 0], sizes = [8, 32], strides = [1, 1]} : vector<8x64xf32> to vector<8x32xf32>
    %121 = math.tanh %119 : vector<8x32xf32>
    %122 = arith.mulf %120, %121 : vector<8x32xf32>
    %cst_20 = arith.constant dense<0.000000e+00> : vector<8x128xf32>
    %123 = tpu.matmul %122, %7, %cst_20 {dimension_numbers = #tpu.dot_dimension_numbers<[1], [0], [0], [1], [0, 0, 1, 1], [], []>} : vector<8x32xf32>, vector<32x128xf32>, vector<8x128xf32> -> vector<8x128xf32>
    %124 = arith.addf %32, %123 : vector<8x128xf32>
    %125 = arith.negf %124 : vector<8x128xf32>
    %126 = math.exp %125 : vector<8x128xf32>
    %cst_21 = arith.constant 1.000000e+00 : f32
    %127 = vector.broadcast %cst_21 : f32 to vector<8x128xf32>
    %128 = arith.addf %127, %126 : vector<8x128xf32>
    %129 = arith.divf %127, %128 : vector<8x128xf32>
    %cst_22 = arith.constant 2.000000e+00 : f32
    %130 = vector.broadcast %cst_22 : f32 to vector<8x128xf32>
    %131 = arith.mulf %130, %129 : vector<8x128xf32>
    %cst_23 = arith.constant 1.000000e+00 : f32
    %132 = vector.broadcast %cst_23 : f32 to vector<8x128xf32>
    %133 = arith.subf %131, %132 : vector<8x128xf32>
    %134 = arith.select %2, %133, %129 : vector<8x128xi1>, vector<8x128xf32>
    %135 = vector.extract_strided_slice %134 {offsets = [0, 0], sizes = [8, 64], strides = [1, 1]} : vector<8x128xf32> to vector<8x64xf32>
    %136 = vector.extract_strided_slice %134 {offsets = [0, 64], sizes = [8, 64], strides = [1, 1]} : vector<8x128xf32> to vector<8x64xf32>
    %137 = arith.mulf %135, %136 : vector<8x64xf32>
    %138 = vector.extract_strided_slice %135 {offsets = [0, 0], sizes = [8, 32], strides = [1, 1]} : vector<8x64xf32> to vector<8x32xf32>
    %139 = arith.mulf %138, %119 : vector<8x32xf32>
    %140 = vector.extract_strided_slice %137 {offsets = [0, 32], sizes = [8, 32], strides = [1, 1]} : vector<8x64xf32> to vector<8x32xf32>
    %141 = arith.addf %139, %140 : vector<8x32xf32>
    %142 = vector.extract_strided_slice %136 {offsets = [0, 0], sizes = [8, 32], strides = [1, 1]} : vector<8x64xf32> to vector<8x32xf32>
    %143 = math.tanh %141 : vector<8x32xf32>
    %144 = arith.mulf %142, %143 : vector<8x32xf32>
    %cst_24 = arith.constant dense<0.000000e+00> : vector<8x128xf32>
    %145 = tpu.matmul %144, %7, %cst_24 {dimension_numbers = #tpu.dot_dimension_numbers<[1], [0], [0], [1], [0, 0, 1, 1], [], []>} : vector<8x32xf32>, vector<32x128xf32>, vector<8x128xf32> -> vector<8x128xf32>
    %146 = arith.addf %38, %145 : vector<8x128xf32>
    %147 = arith.negf %146 : vector<8x128xf32>
    %148 = math.exp %147 : vector<8x128xf32>
    %cst_25 = arith.constant 1.000000e+00 : f32
    %149 = vector.broadcast %cst_25 : f32 to vector<8x128xf32>
    %150 = arith.addf %149, %148 : vector<8x128xf32>
    %151 = arith.divf %149, %150 : vector<8x128xf32>
    %cst_26 = arith.constant 2.000000e+00 : f32
    %152 = vector.broadcast %cst_26 : f32 to vector<8x128xf32>
    %153 = arith.mulf %152, %151 : vector<8x128xf32>
    %cst_27 = arith.constant 1.000000e+00 : f32
    %154 = vector.broadcast %cst_27 : f32 to vector<8x128xf32>
    %155 = arith.subf %153, %154 : vector<8x128xf32>
    %156 = arith.select %2, %155, %151 : vector<8x128xi1>, vector<8x128xf32>
    %157 = vector.extract_strided_slice %156 {offsets = [0, 0], sizes = [8, 64], strides = [1, 1]} : vector<8x128xf32> to vector<8x64xf32>
    %158 = vector.extract_strided_slice %156 {offsets = [0, 64], sizes = [8, 64], strides = [1, 1]} : vector<8x128xf32> to vector<8x64xf32>
    %159 = arith.mulf %157, %158 : vector<8x64xf32>
    %160 = vector.extract_strided_slice %157 {offsets = [0, 0], sizes = [8, 32], strides = [1, 1]} : vector<8x64xf32> to vector<8x32xf32>
    %161 = arith.mulf %160, %141 : vector<8x32xf32>
    %162 = vector.extract_strided_slice %159 {offsets = [0, 32], sizes = [8, 32], strides = [1, 1]} : vector<8x64xf32> to vector<8x32xf32>
    %163 = arith.addf %161, %162 : vector<8x32xf32>
    %164 = vector.extract_strided_slice %158 {offsets = [0, 0], sizes = [8, 32], strides = [1, 1]} : vector<8x64xf32> to vector<8x32xf32>
    %165 = math.tanh %163 : vector<8x32xf32>
    %166 = arith.mulf %164, %165 : vector<8x32xf32>
    %cst_28 = arith.constant dense<0.000000e+00> : vector<8x128xf32>
    %167 = tpu.matmul %166, %7, %cst_28 {dimension_numbers = #tpu.dot_dimension_numbers<[1], [0], [0], [1], [0, 0, 1, 1], [], []>} : vector<8x32xf32>, vector<32x128xf32>, vector<8x128xf32> -> vector<8x128xf32>
    %168 = arith.addf %44, %167 : vector<8x128xf32>
    %169 = arith.negf %168 : vector<8x128xf32>
    %170 = math.exp %169 : vector<8x128xf32>
    %cst_29 = arith.constant 1.000000e+00 : f32
    %171 = vector.broadcast %cst_29 : f32 to vector<8x128xf32>
    %172 = arith.addf %171, %170 : vector<8x128xf32>
    %173 = arith.divf %171, %172 : vector<8x128xf32>
    %cst_30 = arith.constant 2.000000e+00 : f32
    %174 = vector.broadcast %cst_30 : f32 to vector<8x128xf32>
    %175 = arith.mulf %174, %173 : vector<8x128xf32>
    %cst_31 = arith.constant 1.000000e+00 : f32
    %176 = vector.broadcast %cst_31 : f32 to vector<8x128xf32>
    %177 = arith.subf %175, %176 : vector<8x128xf32>
    %178 = arith.select %2, %177, %173 : vector<8x128xi1>, vector<8x128xf32>
    %179 = vector.extract_strided_slice %178 {offsets = [0, 0], sizes = [8, 64], strides = [1, 1]} : vector<8x128xf32> to vector<8x64xf32>
    %180 = vector.extract_strided_slice %178 {offsets = [0, 64], sizes = [8, 64], strides = [1, 1]} : vector<8x128xf32> to vector<8x64xf32>
    %181 = arith.mulf %179, %180 : vector<8x64xf32>
    %182 = vector.extract_strided_slice %179 {offsets = [0, 0], sizes = [8, 32], strides = [1, 1]} : vector<8x64xf32> to vector<8x32xf32>
    %183 = arith.mulf %182, %163 : vector<8x32xf32>
    %184 = vector.extract_strided_slice %181 {offsets = [0, 32], sizes = [8, 32], strides = [1, 1]} : vector<8x64xf32> to vector<8x32xf32>
    %185 = arith.addf %183, %184 : vector<8x32xf32>
    %186 = vector.extract_strided_slice %180 {offsets = [0, 0], sizes = [8, 32], strides = [1, 1]} : vector<8x64xf32> to vector<8x32xf32>
    %187 = math.tanh %185 : vector<8x32xf32>
    %188 = arith.mulf %186, %187 : vector<8x32xf32>
    %cst_32 = arith.constant dense<0.000000e+00> : vector<8x128xf32>
    %189 = tpu.matmul %188, %7, %cst_32 {dimension_numbers = #tpu.dot_dimension_numbers<[1], [0], [0], [1], [0, 0, 1, 1], [], []>} : vector<8x32xf32>, vector<32x128xf32>, vector<8x128xf32> -> vector<8x128xf32>
    %190 = arith.addf %50, %189 : vector<8x128xf32>
    %191 = arith.negf %190 : vector<8x128xf32>
    %192 = math.exp %191 : vector<8x128xf32>
    %cst_33 = arith.constant 1.000000e+00 : f32
    %193 = vector.broadcast %cst_33 : f32 to vector<8x128xf32>
    %194 = arith.addf %193, %192 : vector<8x128xf32>
    %195 = arith.divf %193, %194 : vector<8x128xf32>
    %cst_34 = arith.constant 2.000000e+00 : f32
    %196 = vector.broadcast %cst_34 : f32 to vector<8x128xf32>
    %197 = arith.mulf %196, %195 : vector<8x128xf32>
    %cst_35 = arith.constant 1.000000e+00 : f32
    %198 = vector.broadcast %cst_35 : f32 to vector<8x128xf32>
    %199 = arith.subf %197, %198 : vector<8x128xf32>
    %200 = arith.select %2, %199, %195 : vector<8x128xi1>, vector<8x128xf32>
    %201 = vector.extract_strided_slice %200 {offsets = [0, 0], sizes = [8, 64], strides = [1, 1]} : vector<8x128xf32> to vector<8x64xf32>
    %202 = vector.extract_strided_slice %200 {offsets = [0, 64], sizes = [8, 64], strides = [1, 1]} : vector<8x128xf32> to vector<8x64xf32>
    %203 = arith.mulf %201, %202 : vector<8x64xf32>
    %204 = vector.extract_strided_slice %201 {offsets = [0, 0], sizes = [8, 32], strides = [1, 1]} : vector<8x64xf32> to vector<8x32xf32>
    %205 = arith.mulf %204, %185 : vector<8x32xf32>
    %206 = vector.extract_strided_slice %203 {offsets = [0, 32], sizes = [8, 32], strides = [1, 1]} : vector<8x64xf32> to vector<8x32xf32>
    %207 = arith.addf %205, %206 : vector<8x32xf32>
    %208 = vector.extract_strided_slice %202 {offsets = [0, 0], sizes = [8, 32], strides = [1, 1]} : vector<8x64xf32> to vector<8x32xf32>
    %209 = math.tanh %207 : vector<8x32xf32>
    %210 = arith.mulf %208, %209 : vector<8x32xf32>
    %cst_36 = arith.constant dense<0.000000e+00> : vector<8x128xf32>
    %211 = tpu.matmul %210, %7, %cst_36 {dimension_numbers = #tpu.dot_dimension_numbers<[1], [0], [0], [1], [0, 0, 1, 1], [], []>} : vector<8x32xf32>, vector<32x128xf32>, vector<8x128xf32> -> vector<8x128xf32>
    %212 = arith.addf %56, %211 : vector<8x128xf32>
    %213 = arith.negf %212 : vector<8x128xf32>
    %214 = math.exp %213 : vector<8x128xf32>
    %cst_37 = arith.constant 1.000000e+00 : f32
    %215 = vector.broadcast %cst_37 : f32 to vector<8x128xf32>
    %216 = arith.addf %215, %214 : vector<8x128xf32>
    %217 = arith.divf %215, %216 : vector<8x128xf32>
    %cst_38 = arith.constant 2.000000e+00 : f32
    %218 = vector.broadcast %cst_38 : f32 to vector<8x128xf32>
    %219 = arith.mulf %218, %217 : vector<8x128xf32>
    %cst_39 = arith.constant 1.000000e+00 : f32
    %220 = vector.broadcast %cst_39 : f32 to vector<8x128xf32>
    %221 = arith.subf %219, %220 : vector<8x128xf32>
    %222 = arith.select %2, %221, %217 : vector<8x128xi1>, vector<8x128xf32>
    %223 = vector.extract_strided_slice %222 {offsets = [0, 0], sizes = [8, 64], strides = [1, 1]} : vector<8x128xf32> to vector<8x64xf32>
    %224 = vector.extract_strided_slice %222 {offsets = [0, 64], sizes = [8, 64], strides = [1, 1]} : vector<8x128xf32> to vector<8x64xf32>
    %225 = arith.mulf %223, %224 : vector<8x64xf32>
    %226 = vector.extract_strided_slice %223 {offsets = [0, 0], sizes = [8, 32], strides = [1, 1]} : vector<8x64xf32> to vector<8x32xf32>
    %227 = arith.mulf %226, %207 : vector<8x32xf32>
    %228 = vector.extract_strided_slice %225 {offsets = [0, 32], sizes = [8, 32], strides = [1, 1]} : vector<8x64xf32> to vector<8x32xf32>
    %229 = arith.addf %227, %228 : vector<8x32xf32>
    %230 = vector.extract_strided_slice %224 {offsets = [0, 0], sizes = [8, 32], strides = [1, 1]} : vector<8x64xf32> to vector<8x32xf32>
    %231 = math.tanh %229 : vector<8x32xf32>
    %232 = arith.mulf %230, %231 : vector<8x32xf32>
    %c0_40 = arith.constant 0 : index
    %c0_41 = arith.constant 0 : index
    %233 = vector.load %arg5[%c0_40, %c0_41] : memref<1x128xf32, #tpu.memory_space<vmem>>, vector<1x128xf32>
    %c0_42 = arith.constant 0 : index
    %c0_43 = arith.constant 0 : index
    %234 = vector.load %arg6[%c0_42, %c0_43] : memref<32x128xf32, #tpu.memory_space<vmem>>, vector<32x128xf32>
    %c0_44 = arith.constant 0 : index
    %c0_45 = arith.constant 0 : index
    %235 = vector.load %arg7[%c0_44, %c0_45] : memref<1x128xf32, #tpu.memory_space<vmem>>, vector<1x128xf32>
    %c0_46 = arith.constant 0 : index
    %c0_47 = arith.constant 0 : index
    %236 = vector.load %arg8[%c0_46, %c0_47] : memref<32x128xf32, #tpu.memory_space<vmem>>, vector<32x128xf32>
    %c0_48 = arith.constant 0 : index
    %c0_49 = arith.constant 0 : index
    %237 = vector.load %arg9[%c0_48, %c0_49] : memref<1x128xf32, #tpu.memory_space<vmem>>, vector<1x128xf32>
    %238 = vector.extract_strided_slice %5 {offsets = [0, 7], sizes = [8, 1], strides = [1, 1]} : vector<8x8xf32> to vector<8x1xf32>
    %239 = vector.broadcast %238 : vector<8x1xf32> to vector<8x128xf32>
    %240 = vector.broadcast %233 : vector<1x128xf32> to vector<8x128xf32>
    %241 = arith.mulf %239, %240 : vector<8x128xf32>
    %242 = vector.broadcast %235 : vector<1x128xf32> to vector<8x128xf32>
    %243 = arith.addf %241, %242 : vector<8x128xf32>
    %cst_50 = arith.constant dense<0.000000e+00> : vector<8x128xf32>
    %244 = tpu.matmul %232, %234, %cst_50 {dimension_numbers = #tpu.dot_dimension_numbers<[1], [0], [0], [1], [0, 0, 1, 1], [], []>} : vector<8x32xf32>, vector<32x128xf32>, vector<8x128xf32> -> vector<8x128xf32>
    %245 = arith.addf %243, %244 : vector<8x128xf32>
    %246 = arith.negf %245 : vector<8x128xf32>
    %247 = math.exp %246 : vector<8x128xf32>
    %cst_51 = arith.constant 1.000000e+00 : f32
    %248 = vector.broadcast %cst_51 : f32 to vector<8x128xf32>
    %249 = arith.addf %248, %247 : vector<8x128xf32>
    %250 = arith.divf %248, %249 : vector<8x128xf32>
    %cst_52 = arith.constant 2.000000e+00 : f32
    %251 = vector.broadcast %cst_52 : f32 to vector<8x128xf32>
    %252 = arith.mulf %251, %250 : vector<8x128xf32>
    %cst_53 = arith.constant 1.000000e+00 : f32
    %253 = vector.broadcast %cst_53 : f32 to vector<8x128xf32>
    %254 = arith.subf %252, %253 : vector<8x128xf32>
    %255 = arith.select %2, %254, %250 : vector<8x128xi1>, vector<8x128xf32>
    %256 = vector.extract_strided_slice %255 {offsets = [0, 0], sizes = [8, 64], strides = [1, 1]} : vector<8x128xf32> to vector<8x64xf32>
    %257 = vector.extract_strided_slice %255 {offsets = [0, 64], sizes = [8, 64], strides = [1, 1]} : vector<8x128xf32> to vector<8x64xf32>
    %258 = arith.mulf %256, %257 : vector<8x64xf32>
    %259 = vector.extract_strided_slice %256 {offsets = [0, 0], sizes = [8, 32], strides = [1, 1]} : vector<8x64xf32> to vector<8x32xf32>
    %260 = arith.mulf %259, %229 : vector<8x32xf32>
    %261 = vector.extract_strided_slice %258 {offsets = [0, 32], sizes = [8, 32], strides = [1, 1]} : vector<8x64xf32> to vector<8x32xf32>
    %262 = arith.addf %260, %261 : vector<8x32xf32>
    %263 = vector.extract_strided_slice %257 {offsets = [0, 0], sizes = [8, 32], strides = [1, 1]} : vector<8x64xf32> to vector<8x32xf32>
    %264 = math.tanh %262 : vector<8x32xf32>
    %265 = arith.mulf %263, %264 : vector<8x32xf32>
    %cst_54 = arith.constant dense<0.000000e+00> : vector<8x128xf32>
    %266 = tpu.matmul %265, %236, %cst_54 {dimension_numbers = #tpu.dot_dimension_numbers<[1], [0], [0], [1], [0, 0, 1, 1], [], []>} : vector<8x32xf32>, vector<32x128xf32>, vector<8x128xf32> -> vector<8x128xf32>
    %267 = vector.broadcast %237 : vector<1x128xf32> to vector<8x128xf32>
    %268 = arith.addf %267, %266 : vector<8x128xf32>
    %269 = arith.negf %268 : vector<8x128xf32>
    %270 = math.exp %269 : vector<8x128xf32>
    %cst_55 = arith.constant 1.000000e+00 : f32
    %271 = vector.broadcast %cst_55 : f32 to vector<8x128xf32>
    %272 = arith.addf %271, %270 : vector<8x128xf32>
    %273 = arith.divf %271, %272 : vector<8x128xf32>
    %cst_56 = arith.constant 2.000000e+00 : f32
    %274 = vector.broadcast %cst_56 : f32 to vector<8x128xf32>
    %275 = arith.mulf %274, %273 : vector<8x128xf32>
    %cst_57 = arith.constant 1.000000e+00 : f32
    %276 = vector.broadcast %cst_57 : f32 to vector<8x128xf32>
    %277 = arith.subf %275, %276 : vector<8x128xf32>
    %278 = arith.select %2, %277, %273 : vector<8x128xi1>, vector<8x128xf32>
    %279 = vector.extract_strided_slice %278 {offsets = [0, 0], sizes = [8, 64], strides = [1, 1]} : vector<8x128xf32> to vector<8x64xf32>
    %280 = vector.extract_strided_slice %278 {offsets = [0, 64], sizes = [8, 64], strides = [1, 1]} : vector<8x128xf32> to vector<8x64xf32>
    %281 = arith.mulf %279, %280 : vector<8x64xf32>
    %282 = vector.extract_strided_slice %279 {offsets = [0, 0], sizes = [8, 32], strides = [1, 1]} : vector<8x64xf32> to vector<8x32xf32>
    %283 = arith.mulf %282, %262 : vector<8x32xf32>
    %284 = vector.extract_strided_slice %281 {offsets = [0, 32], sizes = [8, 32], strides = [1, 1]} : vector<8x64xf32> to vector<8x32xf32>
    %285 = arith.addf %283, %284 : vector<8x32xf32>
    %286 = vector.extract_strided_slice %280 {offsets = [0, 0], sizes = [8, 32], strides = [1, 1]} : vector<8x64xf32> to vector<8x32xf32>
    %287 = math.tanh %285 : vector<8x32xf32>
    %288 = arith.mulf %286, %287 : vector<8x32xf32>
    %cst_58 = arith.constant dense<0.000000e+00> : vector<8x128xf32>
    %289 = tpu.matmul %288, %236, %cst_58 {dimension_numbers = #tpu.dot_dimension_numbers<[1], [0], [0], [1], [0, 0, 1, 1], [], []>} : vector<8x32xf32>, vector<32x128xf32>, vector<8x128xf32> -> vector<8x128xf32>
    %290 = vector.broadcast %237 : vector<1x128xf32> to vector<8x128xf32>
    %291 = arith.addf %290, %289 : vector<8x128xf32>
    %292 = arith.negf %291 : vector<8x128xf32>
    %293 = math.exp %292 : vector<8x128xf32>
    %cst_59 = arith.constant 1.000000e+00 : f32
    %294 = vector.broadcast %cst_59 : f32 to vector<8x128xf32>
    %295 = arith.addf %294, %293 : vector<8x128xf32>
    %296 = arith.divf %294, %295 : vector<8x128xf32>
    %cst_60 = arith.constant 2.000000e+00 : f32
    %297 = vector.broadcast %cst_60 : f32 to vector<8x128xf32>
    %298 = arith.mulf %297, %296 : vector<8x128xf32>
    %cst_61 = arith.constant 1.000000e+00 : f32
    %299 = vector.broadcast %cst_61 : f32 to vector<8x128xf32>
    %300 = arith.subf %298, %299 : vector<8x128xf32>
    %301 = arith.select %2, %300, %296 : vector<8x128xi1>, vector<8x128xf32>
    %302 = vector.extract_strided_slice %301 {offsets = [0, 0], sizes = [8, 64], strides = [1, 1]} : vector<8x128xf32> to vector<8x64xf32>
    %303 = vector.extract_strided_slice %301 {offsets = [0, 64], sizes = [8, 64], strides = [1, 1]} : vector<8x128xf32> to vector<8x64xf32>
    %304 = arith.mulf %302, %303 : vector<8x64xf32>
    %305 = vector.extract_strided_slice %302 {offsets = [0, 0], sizes = [8, 32], strides = [1, 1]} : vector<8x64xf32> to vector<8x32xf32>
    %306 = arith.mulf %305, %285 : vector<8x32xf32>
    %307 = vector.extract_strided_slice %304 {offsets = [0, 32], sizes = [8, 32], strides = [1, 1]} : vector<8x64xf32> to vector<8x32xf32>
    %308 = arith.addf %306, %307 : vector<8x32xf32>
    %309 = vector.extract_strided_slice %303 {offsets = [0, 0], sizes = [8, 32], strides = [1, 1]} : vector<8x64xf32> to vector<8x32xf32>
    %310 = math.tanh %308 : vector<8x32xf32>
    %311 = arith.mulf %309, %310 : vector<8x32xf32>
    %cst_62 = arith.constant dense<0.000000e+00> : vector<8x128xf32>
    %312 = tpu.matmul %311, %236, %cst_62 {dimension_numbers = #tpu.dot_dimension_numbers<[1], [0], [0], [1], [0, 0, 1, 1], [], []>} : vector<8x32xf32>, vector<32x128xf32>, vector<8x128xf32> -> vector<8x128xf32>
    %313 = vector.broadcast %237 : vector<1x128xf32> to vector<8x128xf32>
    %314 = arith.addf %313, %312 : vector<8x128xf32>
    %315 = arith.negf %314 : vector<8x128xf32>
    %316 = math.exp %315 : vector<8x128xf32>
    %cst_63 = arith.constant 1.000000e+00 : f32
    %317 = vector.broadcast %cst_63 : f32 to vector<8x128xf32>
    %318 = arith.addf %317, %316 : vector<8x128xf32>
    %319 = arith.divf %317, %318 : vector<8x128xf32>
    %cst_64 = arith.constant 2.000000e+00 : f32
    %320 = vector.broadcast %cst_64 : f32 to vector<8x128xf32>
    %321 = arith.mulf %320, %319 : vector<8x128xf32>
    %cst_65 = arith.constant 1.000000e+00 : f32
    %322 = vector.broadcast %cst_65 : f32 to vector<8x128xf32>
    %323 = arith.subf %321, %322 : vector<8x128xf32>
    %324 = arith.select %2, %323, %319 : vector<8x128xi1>, vector<8x128xf32>
    %325 = vector.extract_strided_slice %324 {offsets = [0, 0], sizes = [8, 64], strides = [1, 1]} : vector<8x128xf32> to vector<8x64xf32>
    %326 = vector.extract_strided_slice %324 {offsets = [0, 64], sizes = [8, 64], strides = [1, 1]} : vector<8x128xf32> to vector<8x64xf32>
    %327 = arith.mulf %325, %326 : vector<8x64xf32>
    %328 = vector.extract_strided_slice %325 {offsets = [0, 0], sizes = [8, 32], strides = [1, 1]} : vector<8x64xf32> to vector<8x32xf32>
    %329 = arith.mulf %328, %308 : vector<8x32xf32>
    %330 = vector.extract_strided_slice %327 {offsets = [0, 32], sizes = [8, 32], strides = [1, 1]} : vector<8x64xf32> to vector<8x32xf32>
    %331 = arith.addf %329, %330 : vector<8x32xf32>
    %332 = vector.extract_strided_slice %326 {offsets = [0, 0], sizes = [8, 32], strides = [1, 1]} : vector<8x64xf32> to vector<8x32xf32>
    %333 = math.tanh %331 : vector<8x32xf32>
    %334 = arith.mulf %332, %333 : vector<8x32xf32>
    %c0_66 = arith.constant 0 : index
    %c0_67 = arith.constant 0 : index
    %335 = vector.load %arg10[%c0_66, %c0_67] : memref<1x32xf32, #tpu.memory_space<vmem>>, vector<1x32xf32>
    %c0_68 = arith.constant 0 : index
    %c0_69 = arith.constant 0 : index
    %336 = vector.load %arg11[%c0_68, %c0_69] : memref<1x1xf32, #tpu.memory_space<vmem>>, vector<1x1xf32>
    %337 = tpu.iota {dimensions = array<i32: 1>} : vector<8x4xi32>
    %cst_70 = arith.constant 0.000000e+00 : f32
    %338 = vector.broadcast %cst_70 : f32 to vector<8x4xf32>
    %339 = vector.broadcast %335 : vector<1x32xf32> to vector<8x32xf32>
    %340 = arith.mulf %265, %339 : vector<8x32xf32>
    %cst_71 = arith.constant dense<0.000000e+00> : vector<8xf32>
    %341 = vector.multi_reduction <add>, %340, %cst_71 [1] : vector<8x32xf32> to vector<8xf32>
    %342 = vector.shape_cast %341 : vector<8xf32> to vector<8x1xf32>
    %343 = vector.broadcast %336 : vector<1x1xf32> to vector<8x1xf32>
    %344 = arith.addf %342, %343 : vector<8x1xf32>
    %c0_i32 = arith.constant 0 : i32
    %345 = vector.broadcast %c0_i32 : i32 to vector<8x4xi32>
    %346 = arith.cmpi eq, %337, %345 : vector<8x4xi32>
    %347 = vector.shape_cast %344 : vector<8x1xf32> to vector<8x1xf32>
    %348 = vector.broadcast %347 : vector<8x1xf32> to vector<8x4xf32>
    %349 = arith.select %346, %348, %338 : vector<8x4xi1>, vector<8x4xf32>
    %350 = vector.broadcast %335 : vector<1x32xf32> to vector<8x32xf32>
    %351 = arith.mulf %288, %350 : vector<8x32xf32>
    %cst_72 = arith.constant dense<0.000000e+00> : vector<8xf32>
    %352 = vector.multi_reduction <add>, %351, %cst_72 [1] : vector<8x32xf32> to vector<8xf32>
    %353 = vector.shape_cast %352 : vector<8xf32> to vector<8x1xf32>
    %354 = vector.broadcast %336 : vector<1x1xf32> to vector<8x1xf32>
    %355 = arith.addf %353, %354 : vector<8x1xf32>
    %c1_i32 = arith.constant 1 : i32
    %356 = vector.broadcast %c1_i32 : i32 to vector<8x4xi32>
    %357 = arith.cmpi eq, %337, %356 : vector<8x4xi32>
    %358 = vector.shape_cast %355 : vector<8x1xf32> to vector<8x1xf32>
    %359 = vector.broadcast %358 : vector<8x1xf32> to vector<8x4xf32>
    %360 = arith.select %357, %359, %349 : vector<8x4xi1>, vector<8x4xf32>
    %361 = vector.broadcast %335 : vector<1x32xf32> to vector<8x32xf32>
    %362 = arith.mulf %311, %361 : vector<8x32xf32>
    %cst_73 = arith.constant dense<0.000000e+00> : vector<8xf32>
    %363 = vector.multi_reduction <add>, %362, %cst_73 [1] : vector<8x32xf32> to vector<8xf32>
    %364 = vector.shape_cast %363 : vector<8xf32> to vector<8x1xf32>
    %365 = vector.broadcast %336 : vector<1x1xf32> to vector<8x1xf32>
    %366 = arith.addf %364, %365 : vector<8x1xf32>
    %c2_i32 = arith.constant 2 : i32
    %367 = vector.broadcast %c2_i32 : i32 to vector<8x4xi32>
    %368 = arith.cmpi eq, %337, %367 : vector<8x4xi32>
    %369 = vector.shape_cast %366 : vector<8x1xf32> to vector<8x1xf32>
    %370 = vector.broadcast %369 : vector<8x1xf32> to vector<8x4xf32>
    %371 = arith.select %368, %370, %360 : vector<8x4xi1>, vector<8x4xf32>
    %372 = vector.broadcast %335 : vector<1x32xf32> to vector<8x32xf32>
    %373 = arith.mulf %334, %372 : vector<8x32xf32>
    %cst_74 = arith.constant dense<0.000000e+00> : vector<8xf32>
    %374 = vector.multi_reduction <add>, %373, %cst_74 [1] : vector<8x32xf32> to vector<8xf32>
    %375 = vector.shape_cast %374 : vector<8xf32> to vector<8x1xf32>
    %376 = vector.broadcast %336 : vector<1x1xf32> to vector<8x1xf32>
    %377 = arith.addf %375, %376 : vector<8x1xf32>
    %c3_i32 = arith.constant 3 : i32
    %378 = vector.broadcast %c3_i32 : i32 to vector<8x4xi32>
    %379 = arith.cmpi eq, %337, %378 : vector<8x4xi32>
    %380 = vector.shape_cast %377 : vector<8x1xf32> to vector<8x1xf32>
    %381 = vector.broadcast %380 : vector<8x1xf32> to vector<8x4xf32>
    %382 = arith.select %379, %381, %371 : vector<8x4xi1>, vector<8x4xf32>
    %c0_75 = arith.constant 0 : index
    %c0_76 = arith.constant 0 : index
    %383 = vector.load %arg12[%c0_75, %c0_76] : memref<8x4xf32, #tpu.memory_space<vmem>>, vector<8x4xf32>
    tpu.vector_store %arg12[%c0_75, %c0_76], %382 {strides = array<i32>} : memref<8x4xf32, #tpu.memory_space<vmem>>, vector<8x4xf32>,
    return
  }
  func.func @transform_0(%arg0: i32) -> (i32, i32) {
    %c0_i32 = arith.constant 0 : i32
    %c0_i32_0 = arith.constant 0 : i32
    return %arg0, %c0_i32 : i32, i32
  }
  func.func @transform_1(%arg0: i32) -> (i32, i32) {
    %c0_i32 = arith.constant 0 : i32
    %c0_i32_0 = arith.constant 0 : i32
    %c0_i32_1 = arith.constant 0 : i32
    return %c0_i32, %c0_i32_0 : i32, i32
  }
  func.func @transform_2(%arg0: i32) -> (i32, i32) {
    %c0_i32 = arith.constant 0 : i32
    %c0_i32_0 = arith.constant 0 : i32
    %c0_i32_1 = arith.constant 0 : i32
    return %c0_i32, %c0_i32_0 : i32, i32
  }
  func.func @transform_3(%arg0: i32) -> (i32, i32) {
    %c0_i32 = arith.constant 0 : i32
    %c0_i32_0 = arith.constant 0 : i32
    %c0_i32_1 = arith.constant 0 : i32
    return %c0_i32, %c0_i32_0 : i32, i32
  }
  func.func @transform_4(%arg0: i32) -> (i32, i32) {
    %c0_i32 = arith.constant 0 : i32
    %c0_i32_0 = arith.constant 0 : i32
    %c0_i32_1 = arith.constant 0 : i32
    return %c0_i32, %c0_i32_0 : i32, i32
  }
  func.func @transform_5(%arg0: i32) -> (i32, i32) {
    %c0_i32 = arith.constant 0 : i32
    %c0_i32_0 = arith.constant 0 : i32
    %c0_i32_1 = arith.constant 0 : i32
    return %c0_i32, %c0_i32_0 : i32, i32
  }
  func.func @transform_6(%arg0: i32) -> (i32, i32) {
    %c0_i32 = arith.constant 0 : i32
    %c0_i32_0 = arith.constant 0 : i32
    %c0_i32_1 = arith.constant 0 : i32
    return %c0_i32, %c0_i32_0 : i32, i32
  }
  func.func @transform_7(%arg0: i32) -> (i32, i32) {
    %c0_i32 = arith.constant 0 : i32
    %c0_i32_0 = arith.constant 0 : i32
    %c0_i32_1 = arith.constant 0 : i32
    return %c0_i32, %c0_i32_0 : i32, i32
  }
  func.func @transform_8(%arg0: i32) -> (i32, i32) {
    %c0_i32 = arith.constant 0 : i32
    %c0_i32_0 = arith.constant 0 : i32
    %c0_i32_1 = arith.constant 0 : i32
    return %c0_i32, %c0_i32_0 : i32, i32
  }
  func.func @transform_9(%arg0: i32) -> (i32, i32) {
    %c0_i32 = arith.constant 0 : i32
    %c0_i32_0 = arith.constant 0 : i32
    %c0_i32_1 = arith.constant 0 : i32
    return %c0_i32, %c0_i32_0 : i32, i32
  }
  func.func @transform_10(%arg0: i32) -> (i32, i32) {
    %c0_i32 = arith.constant 0 : i32
    %c0_i32_0 = arith.constant 0 : i32
    %c0_i32_1 = arith.constant 0 : i32
    return %c0_i32, %c0_i32_0 : i32, i32
  }
  func.func @transform_11(%arg0: i32) -> (i32, i32) {
    %c0_i32 = arith.constant 0 : i32
    %c0_i32_0 = arith.constant 0 : i32
    return %arg0, %c0_i32 : i32, i32
  }
}

</mosaic_0001>

<bundles_post_ra>
// kernel: waterlevel_forward.1
= control target key start
LH: loop header
LB: loop body
LE: loop exit
PB: predicated region body
PF: predicated region fallthrough
CT: control target
= control target key end

     0   :  { %s2282_s0 = inlined_call_operand.vmem [shape: f32[8,8], index: 0, kind: input, shape index: {}]   ;;  %s2283_s1 = inlined_call_operand.vmem [shape: f32[1,128], index: 1, kind: input, shape index: {}]   ;;  %s2284_s2 = inlined_call_operand.vmem [shape: f32[32,128], index: 2, kind: input, shape index: {}]   ;;  %s2285_s3 = inlined_call_operand.vmem [shape: f32[1,128], index: 3, kind: input, shape index: {}]   ;;  %s2286_s4 = inlined_call_operand.vmem [shape: f32[1,128], index: 4, kind: input, shape index: {}]   ;;  %s2287_s5 = inlined_call_operand.hbm [shape: f32[32,128], index: 5, kind: input, shape index: {}]   ;;  %s2288_s6 = inlined_call_operand.vmem [shape: f32[1,128], index: 6, kind: input, shape index: {}]   ;;  %s2289_s7 = inlined_call_operand.hbm [shape: f32[32,128], index: 7, kind: input, shape index: {}]   ;;  %s2290_s8 = inlined_call_operand.vmem [shape: f32[1,128], index: 8, kind: input, shape index: {}]   ;;  %s2291_s9 = inlined_call_operand.vmem [shape: f32[1,32], index: 9, kind: input, shape index: {}]   ;;  %s2292_s10 = inlined_call_operand.<no memory space> [shape: f32[1,1], index: 10, kind: input, shape index: {}]   ;;  %s2293_s11 = inlined_call_operand.vmem [shape: f32[8,4], index: 11, kind: output, shape index: {}]  }
   0x1   :  { %v16_v0 = vstv %s2292_s10 }
   0x2   :  { %17 = vst [vmem:[#allocation2] sm:$0x1] %v16_v0 }
   0x3   :  { %18 = vsyncpa [#allocation4], 0 }
   0x4   :  { %19 = vsyncpa [#allocation6], 0  ;;  %s1934_s19 = smov [#allocation3]   ;;  %s1886_s23 = scalar_lea.hbm %s2287_s5, 512 }
   0x5   :  { %s35_s20 = sshll.u32 %s1934_s19, 4  ;;  %p1887_p0 = scmp.ne.s32.totalorder %s2287_s5, %s1886_s23  ;;  %s36_s20 = int_to_ptr.vmem [resolvable:$true] %s35_s20 }
   0x6   :  { %p1890_p1 = scmp.lt.u32.totalorder %s1886_s23, %s2287_s5 }
   0x8   :  { %p1892_p2 = pnand %p1890_p1, %p1887_p0 }
   0xa   :  { %1895 = shalt.err (!%p1892_p2)
}
   0xb   :  { %s1896_s10 = scalar_lea.vmem %s36_s20, 512  ;;  %p1901_p4 = scmp.lt.s32.totalorder %s36_s20, %s36_s20 }
   0xc   :  { %p1897_p3 = scmp.ne.s32.totalorder %s36_s20, %s1896_s10  ;;  %p1902_p5 = scmp.lt.s32.totalorder %s1896_s10, %s1896_s10 }
   0xe   :  { %p1903_p6 = por %p1902_p5, %p1901_p4 }
  0x10   :  { %p1904_p7 = pnand %p1903_p6, %p1897_p3 }
  0x12   :  { %1907 = shalt.err (!%p1904_p7)
}
  0x13   :  { %s1935_s28 = smov 128   ;;  %s1936_s29 = smov 8  }
  0x14   :  { %41 = dma.hbm_to_vmem [thread:$0]  %s2287_s5, 512, %s36_s20, [#allocation4], %s1935_s28, %s1935_s28, %s1936_s29  }
  0x15   :  { %s1937_s13 = smov [#allocation5]   ;;  %s1908_s17 = scalar_lea.hbm %s2289_s7, 512 }
  0x16   :  { %s49_s14 = sshll.u32 %s1937_s13, 4  ;;  %p1909_p8 = scmp.ne.s32.totalorder %s2289_s7, %s1908_s17  ;;  %s50_s14 = int_to_ptr.vmem [resolvable:$true] %s49_s14 }
  0x17   :  { %p1912_p9 = scmp.lt.u32.totalorder %s1908_s17, %s2289_s7 }
  0x19   :  { %p1914_p10 = pnand %p1912_p9, %p1909_p8 }
  0x1b   :  { %1917 = shalt.err (!%p1914_p10)
}
  0x1c   :  { %s1918_s23 = scalar_lea.vmem %s50_s14, 512  ;;  %p1923_p12 = scmp.lt.s32.totalorder %s50_s14, %s50_s14 }
  0x1d   :  { %p1919_p11 = scmp.ne.s32.totalorder %s50_s14, %s1918_s23  ;;  %p1924_p13 = scmp.lt.s32.totalorder %s1918_s23, %s1918_s23 }
  0x1f   :  { %p1925_p0 = por %p1924_p13, %p1923_p12 }
  0x21   :  { %p1926_p1 = pnand %p1925_p0, %p1919_p11 }
  0x23   :  { %1929 = shalt.err (!%p1926_p1)
}
  0x24   :  { %55 = dma.hbm_to_vmem [thread:$0]  %s2289_s7, 512, %s50_s14, [#allocation6], %s1935_s28, %s1935_s28, %s1936_s29  }
  0x25   :  { %1930 = dma.done.wait [#allocation4], 512  }
  0x26   :  { %1931 = vsyncadd [#allocation4], 4294966784 }
  0x27   :  { %1932 = dma.done.wait [#allocation6], 512  }
  0x28   :  { %1933 = vsyncadd [#allocation6], 4294966784  ;;  %v1938_v1 = vmov 0.0|0.0   ;;  %vm1939_vm0 = vmmov 0   ;;  %v1940_v2 = vmov 0.0   ;;  %v1941_v3 = vmov 0  }
  0x29   :  { %1715 = vmatprep.subr.bf16.mxu0 %v1938_v1  ;;  %1591 = vmatprep.mubr.msk.f32.mxu0 %vm1939_vm0, %v1940_v2  ;;  %v73_v4 = vld [vmem:[%s2284_s2] sm:$0xff]  ;;  %v74_v5 = vld [vmem:[%s2284_s2 + $0x8] sm:$0xff]  ;;  %v75_v6 = vld [vmem:[%s2284_s2 + $0x10] sm:$0xff]  ;;  %v68_v22 = vlaneseq  ;;  %v1944_v34 = vmov 1   ;;  %vm139_vm2 = vcmask 261120   ;;  %v1945_v57 = vmov 2  }
  0x2a   :  { %1804 = vset.pattern.permute.xlu0 %v1941_v3  ;;  %1721 = vmatprep.subr.bf16.mxu1 %v1938_v1  ;;  %v2054_v7 = vpack.c.bf16 %v74_v5, %v73_v4  ;;  %v76_v8 = vld [vmem:[%s2284_s2 + $0x18] sm:$0xff]  ;;  %v2062_v9 = vld [vmem:[%s2282_s0] sm:$0xff]  ;;  %vm1473_vm7 = vcmask 31744  }
  0x2b   :  { %1602 = vmatprep.mubr.msk.f32.mxu1 %vm1939_vm0, %v1940_v2  ;;  %80 = vperm.xlu0 %1804, %v2062_v9   ;;  %v2066_v10 = vpack.c.bf16 %v76_v8, %v75_v6  ;;  %v2085_v11 = vld [vmem:[%s2283_s1] ss:$0 sm:$0xff]  ;;  %v2094_v23 = vand.u32 127, %v68_v22  ;;  %s1942_s1 = smov 64  }
  0x2c   :  { %1717 = vmatpush3.bf16.msra.mxu0 %v2054_v7  ;;  %1723 = vmatpush3.bf16.msra.mxu1 %v2054_v7  ;;  %v2091_v14 = vld [vmem:[%s2285_s3] ss:$0 sm:$0xff]  ;;  %s1943_s3 = smov 96  }
  0x2d   :  { %1718 = vmatprep.subr.bf16.mxu0 %v1938_v1  ;;  %1724 = vmatprep.subr.bf16.mxu1 %v1938_v1  ;;  %vm70_vm1 = vcmp.ge.s32.totalorder %v2094_v23, 96  ;;  %vm1418_vm3 = vcmp.eq.s32.totalorder %v2094_v23, 0  ;;  %vm1434_vm4 = vcmp.eq.s32.totalorder %v2094_v23, 1  ;;  %vm1450_vm5 = vcmp.eq.s32.totalorder %v2094_v23, 2 }
  0x2e   :  { %1805 = vset.pattern.permute.xlu1 %v1944_v34  ;;  %vm1466_vm6 = vcmp.eq.s32.totalorder %v2094_v23, 3 }
  0x2f   :  { %1806 = vset.pattern.permute.xlu0 %v1945_v57 }
  0x30   :  { %1720 = vmatpush3.bf16.msra.mxu0 %v2066_v10  ;;  %1726 = vmatpush3.bf16.msra.mxu1 %v2066_v10 }
  0x31   :  { %1727 = vmatprep.subr.bf16.mxu0 %v1938_v1  ;;  %1733 = vmatprep.subr.bf16.mxu1 %v1938_v1 }
  0x33   :  { %1592 = vmatmul.mubr.f32.vlgmr.msra.gmra.mrb[0].mxu0 %v1940_v2 }
  0x34   :  { %1729 = vmatpush3.bf16.msra.mxu0 %v2054_v7  ;;  %1613 = vmatprep.mubr.msk.f32.mxu0 %vm1939_vm0, %v1940_v2 }
  0x35   :  { %1730 = vmatprep.subr.bf16.mxu0 %v1938_v1 }
  0x38   :  { %1732 = vmatpush3.bf16.msra.mxu0 %v2066_v10 }
  0x39   :  { %1739 = vmatprep.subr.bf16.mxu0 %v1938_v1 }
  0xaa   :  { %v81_v12 = vpop.permute.xlu0 %80 }
  0xab   :  { %v89_v13 = vmul.f32 %v2085_v11, %v81_v12 }
  0xad   :  { %v96_v15 = vadd.f32 %v2091_v14, %v89_v13 }
 0x106   :  { %v209_v16 = vpop.f32.mrb[0].mxu0 }
 0x107   :  { %v213_v17 = vadd.f32 %v209_v16, %v96_v15  ;;  %v1593_v18 = vpop.f32.mrb[1].mxu0 }
 0x109   :  { %v1483_v19 = vmul.f32 -1.442695, %v213_v17 }
 0x10b   :  { %1814 = vpow2.f32 %v1483_v19 }
 0x115   :  { %v1815_v20 = vpop.eup %1814 }
 0x116   :  { %v217_v21 = vadd.f32 1.0, %v1815_v20 }
 0x118   :  { %1816 = vrcp.f32 %v217_v21 }
 0x122   :  { %v1817_v24 = vpop.eup %1816 }
 0x123   :  { %v220_v25 = vmul.f32 2.0, %v1817_v24 }
 0x125   :  { %v1484_v26 = vadd.f32 -1.0, %v220_v25  ;;  %v1946_v25 = vmov 3  }
 0x127   :  { %v222_v27 = vsel %vm70_vm1, %v1484_v26, %v1817_v24 }
 0x128   :  { %224 = vrot.lane.b32.xlu0 %v222_v27, %s1942_s1  ;;  %v228_v30 = vmul.f32 0.0, %v222_v27 }
 0x19a   :  { %v225_v28 = vpop.permute.xlu0 %224 }
 0x19b   :  { %v227_v29 = vmul.f32 %v225_v28, %v222_v27 }
 0x19d   :  { %230 = vrot.lane.b32.xlu1 %v227_v29, %s1943_s3 }
 0x20f   :  { %v231_v31 = vpop.permute.xlu1 %230 }
 0x210   :  { %v233_v32 = vadd.f32 %v231_v31, %v228_v30 }
 0x212   :  { %1818 = vtanh.f32 %v233_v32 }
 0x21c   :  { %v1819_v33 = vpop.eup %1818 }
 0x21d   :  { %236 = vrot.lane.b32.xlu1 %v1819_v33, %s1942_s1 }
 0x221   :  { %98 = vperm.xlu1 %1805, %v2062_v9  }
 0x225   :  { %1812 = vset.pattern.permute.xlu1 %v1941_v3 }
 0x28f   :  { %v237_v35 = vpop.permute.xlu1 %236 }
 0x290   :  { %v239_v36 = vmul.f32 %v237_v35, %v222_v27 }
 0x292   :  { %241 = vrot.lane.b32.xlu0 %v239_v36, %s1942_s1 }
 0x2a0   :  { %v99_v38 = vpop.permute.xlu1 %98 }
 0x2a1   :  { %v101_v39 = vmul.f32 %v2085_v11, %v99_v38 }
 0x2a3   :  { %v102_v40 = vadd.f32 %v2091_v14, %v101_v39 }
 0x304   :  { %v242_v37 = vpop.permute.xlu0 %241 }
 0x305   :  { %1603 = vmatmul.mubr.msk.f32.vlgmr.msra.gmra.mrb[0].mxu1 %vm139_vm2, %v242_v37 }
 0x306   :  { %1735 = vmatpush3.bf16.msra.mxu1 %v2054_v7  ;;  %1624 = vmatprep.mubr.msk.f32.mxu1 %vm1939_vm0, %v1940_v2 }
 0x307   :  { %1736 = vmatprep.subr.bf16.mxu1 %v1938_v1 }
 0x30a   :  { %1738 = vmatpush3.bf16.msra.mxu1 %v2066_v10 }
 0x30b   :  { %1745 = vmatprep.subr.bf16.mxu1 %v1938_v1 }
 0x3d8   :  { %v311_v41 = vpop.f32.mrb[0].mxu1 }
 0x3d9   :  { %v315_v42 = vadd.f32 %v311_v41, %v102_v40  ;;  %v1604_v43 = vpop.f32.mrb[1].mxu1 }
 0x3db   :  { %v1486_v44 = vmul.f32 -1.442695, %v315_v42 }
 0x3dd   :  { %1820 = vpow2.f32 %v1486_v44 }
 0x3e7   :  { %v1821_v45 = vpop.eup %1820 }
 0x3e8   :  { %v319_v46 = vadd.f32 1.0, %v1821_v45 }
 0x3ea   :  { %1822 = vrcp.f32 %v319_v46 }
 0x3f4   :  { %v1823_v47 = vpop.eup %1822 }
 0x3f5   :  { %v322_v48 = vmul.f32 2.0, %v1823_v47 }
 0x3f7   :  { %v1487_v49 = vadd.f32 -1.0, %v322_v48  ;;  %v1947_v48 = vmov 4  }
 0x3f9   :  { %v324_v50 = vsel %vm70_vm1, %v1487_v49, %v1823_v47 }
 0x3fa   :  { %326 = vrot.lane.b32.xlu0 %v324_v50, %s1942_s1  ;;  %v330_v53 = vmul.f32 %v324_v50, %v233_v32 }
 0x46c   :  { %v327_v51 = vpop.permute.xlu0 %326 }
 0x46d   :  { %v329_v52 = vmul.f32 %v327_v51, %v324_v50 }
 0x46f   :  { %332 = vrot.lane.b32.xlu1 %v329_v52, %s1943_s3 }
 0x4e1   :  { %v333_v54 = vpop.permute.xlu1 %332 }
 0x4e2   :  { %v335_v55 = vadd.f32 %v333_v54, %v330_v53 }
 0x4e4   :  { %1824 = vtanh.f32 %v335_v55 }
 0x4ee   :  { %v1825_v56 = vpop.eup %1824 }
 0x4ef   :  { %338 = vrot.lane.b32.xlu0 %v1825_v56, %s1942_s1 }
 0x4f3   :  { %104 = vperm.xlu0 %1806, %v2062_v9  }
 0x4f7   :  { %1807 = vset.pattern.permute.xlu0 %v1946_v25 }
 0x561   :  { %v339_v58 = vpop.permute.xlu0 %338 }
 0x562   :  { %v341_v59 = vmul.f32 %v339_v58, %v324_v50 }
 0x564   :  { %343 = vrot.lane.b32.xlu1 %v341_v59, %s1942_s1 }
 0x572   :  { %v105_v61 = vpop.permute.xlu0 %104 }
 0x573   :  { %v107_v62 = vmul.f32 %v2085_v11, %v105_v61 }
 0x575   :  { %v108_v63 = vadd.f32 %v2091_v14, %v107_v62 }
 0x5d6   :  { %v344_v60 = vpop.permute.xlu1 %343 }
 0x5d7   :  { %1614 = vmatmul.mubr.msk.f32.vlgmr.msra.gmra.mrb[2].mxu0 %vm139_vm2, %v344_v60 }
 0x5d8   :  { %1741 = vmatpush3.bf16.msra.mxu0 %v2054_v7  ;;  %1635 = vmatprep.mubr.msk.f32.mxu0 %vm1939_vm0, %v1940_v2 }
 0x5d9   :  { %1742 = vmatprep.subr.bf16.mxu0 %v1938_v1 }
 0x5dc   :  { %1744 = vmatpush3.bf16.msra.mxu0 %v2066_v10 }
 0x5dd   :  { %1751 = vmatprep.subr.bf16.mxu0 %v1938_v1 }
 0x6aa   :  { %v413_v0 = vpop.f32.mrb[2].mxu0 }
 0x6ab   :  { %v417_v4 = vadd.f32 %v413_v0, %v108_v63  ;;  %v1615_v5 = vpop.f32.mrb[3].mxu0 }
 0x6ad   :  { %v1489_v6 = vmul.f32 -1.442695, %v417_v4 }
 0x6af   :  { %1826 = vpow2.f32 %v1489_v6 }
 0x6b9   :  { %v1827_v8 = vpop.eup %1826 }
 0x6ba   :  { %v421_v12 = vadd.f32 1.0, %v1827_v8 }
 0x6bc   :  { %1828 = vrcp.f32 %v421_v12 }
 0x6c6   :  { %v1829_v13 = vpop.eup %1828 }
 0x6c7   :  { %v424_v15 = vmul.f32 2.0, %v1829_v13 }
 0x6c9   :  { %v1490_v16 = vadd.f32 -1.0, %v424_v15  ;;  %v1948_v15 = vmov 5  }
 0x6cb   :  { %v426_v17 = vsel %vm70_vm1, %v1490_v16, %v1829_v13 }
 0x6cc   :  { %428 = vrot.lane.b32.xlu1 %v426_v17, %s1942_s1  ;;  %v432_v20 = vmul.f32 %v426_v17, %v335_v55 }
 0x73e   :  { %v429_v18 = vpop.permute.xlu1 %428 }
 0x73f   :  { %v431_v19 = vmul.f32 %v429_v18, %v426_v17 }
 0x741   :  { %434 = vrot.lane.b32.xlu1 %v431_v19, %s1943_s3 }
 0x7b3   :  { %v435_v21 = vpop.permute.xlu1 %434 }
 0x7b4   :  { %v437_v22 = vadd.f32 %v435_v21, %v432_v20 }
 0x7b6   :  { %1830 = vtanh.f32 %v437_v22 }
 0x7c0   :  { %v1831_v24 = vpop.eup %1830 }
 0x7c1   :  { %440 = vrot.lane.b32.xlu0 %v1831_v24, %s1942_s1 }
 0x7c5   :  { %110 = vperm.xlu0 %1807, %v2062_v9  }
 0x7c9   :  { %1808 = vset.pattern.permute.xlu0 %v1947_v48 }
 0x833   :  { %v441_v26 = vpop.permute.xlu0 %440 }
 0x834   :  { %v443_v27 = vmul.f32 %v441_v26, %v426_v17 }
 0x836   :  { %445 = vrot.lane.b32.xlu1 %v443_v27, %s1942_s1 }
 0x844   :  { %v111_v29 = vpop.permute.xlu0 %110 }
 0x845   :  { %v113_v30 = vmul.f32 %v2085_v11, %v111_v29 }
 0x847   :  { %v114_v31 = vadd.f32 %v2091_v14, %v113_v30 }
 0x8a8   :  { %v446_v28 = vpop.permute.xlu1 %445 }
 0x8a9   :  { %1625 = vmatmul.mubr.msk.f32.vlgmr.msra.gmra.mrb[2].mxu1 %vm139_vm2, %v446_v28 }
 0x8aa   :  { %1747 = vmatpush3.bf16.msra.mxu1 %v2054_v7  ;;  %1646 = vmatprep.mubr.msk.f32.mxu1 %vm1939_vm0, %v1940_v2 }
 0x8ab   :  { %1748 = vmatprep.subr.bf16.mxu1 %v1938_v1 }
 0x8ae   :  { %1750 = vmatpush3.bf16.msra.mxu1 %v2066_v10 }
 0x8af   :  { %1757 = vmatprep.subr.bf16.mxu1 %v1938_v1 }
 0x97c   :  { %v515_v32 = vpop.f32.mrb[2].mxu1 }
 0x97d   :  { %v519_v33 = vadd.f32 %v515_v32, %v114_v31  ;;  %v1626_v34 = vpop.f32.mrb[3].mxu1 }
 0x97f   :  { %v1492_v35 = vmul.f32 -1.442695, %v519_v33 }
 0x981   :  { %1832 = vpow2.f32 %v1492_v35 }
 0x98b   :  { %v1833_v36 = vpop.eup %1832 }
 0x98c   :  { %v523_v37 = vadd.f32 1.0, %v1833_v36 }
 0x98e   :  { %1834 = vrcp.f32 %v523_v37  ;;  %v1949_v37 = vmov 6  }
 0x998   :  { %v1835_v38 = vpop.eup %1834 }
 0x999   :  { %v526_v39 = vmul.f32 2.0, %v1835_v38 }
 0x99b   :  { %v1493_v40 = vadd.f32 -1.0, %v526_v39 }
 0x99d   :  { %v528_v41 = vsel %vm70_vm1, %v1493_v40, %v1835_v38 }
 0x99e   :  { %530 = vrot.lane.b32.xlu1 %v528_v41, %s1942_s1  ;;  %v534_v44 = vmul.f32 %v528_v41, %v437_v22 }
 0xa10   :  { %v531_v42 = vpop.permute.xlu1 %530 }
 0xa11   :  { %v533_v43 = vmul.f32 %v531_v42, %v528_v41 }
 0xa13   :  { %536 = vrot.lane.b32.xlu1 %v533_v43, %s1943_s3 }
 0xa85   :  { %v537_v45 = vpop.permute.xlu1 %536 }
 0xa86   :  { %v539_v46 = vadd.f32 %v537_v45, %v534_v44 }
 0xa88   :  { %1836 = vtanh.f32 %v539_v46 }
 0xa92   :  { %v1837_v47 = vpop.eup %1836 }
 0xa93   :  { %542 = vrot.lane.b32.xlu0 %v1837_v47, %s1942_s1 }
 0xa97   :  { %116 = vperm.xlu0 %1808, %v2062_v9  }
 0xa9b   :  { %1809 = vset.pattern.permute.xlu0 %v1948_v15 }
 0xb05   :  { %v543_v49 = vpop.permute.xlu0 %542 }
 0xb06   :  { %v545_v50 = vmul.f32 %v543_v49, %v528_v41 }
 0xb08   :  { %547 = vrot.lane.b32.xlu1 %v545_v50, %s1942_s1 }
 0xb16   :  { %v117_v52 = vpop.permute.xlu0 %116 }
 0xb17   :  { %v119_v53 = vmul.f32 %v2085_v11, %v117_v52 }
 0xb19   :  { %v120_v54 = vadd.f32 %v2091_v14, %v119_v53 }
 0xb7a   :  { %v548_v51 = vpop.permute.xlu1 %547 }
 0xb7b   :  { %1636 = vmatmul.mubr.msk.f32.vlgmr.msra.gmra.mrb[4].mxu0 %vm139_vm2, %v548_v51 }
 0xb7c   :  { %1753 = vmatpush3.bf16.msra.mxu0 %v2054_v7  ;;  %1657 = vmatprep.mubr.msk.f32.mxu0 %vm1939_vm0, %v1940_v2 }
 0xb7d   :  { %1754 = vmatprep.subr.bf16.mxu0 %v1938_v1 }
 0xb80   :  { %1756 = vmatpush3.bf16.msra.mxu0 %v2066_v10 }
 0xb81   :  { %1763 = vmatprep.subr.bf16.mxu0 %v1938_v1 }
 0xc4e   :  { %v617_v55 = vpop.f32.mrb[4].mxu0 }
 0xc4f   :  { %v621_v56 = vadd.f32 %v617_v55, %v120_v54  ;;  %v1637_v57 = vpop.f32.mrb[5].mxu0 }
 0xc51   :  { %v1495_v58 = vmul.f32 -1.442695, %v621_v56 }
 0xc53   :  { %1838 = vpow2.f32 %v1495_v58 }
 0xc5d   :  { %v1839_v59 = vpop.eup %1838 }
 0xc5e   :  { %v625_v60 = vadd.f32 1.0, %v1839_v59 }
 0xc60   :  { %1840 = vrcp.f32 %v625_v60  ;;  %v1950_v60 = vmov 7  }
 0xc6a   :  { %v1841_v61 = vpop.eup %1840 }
 0xc6b   :  { %v628_v62 = vmul.f32 2.0, %v1841_v61 }
 0xc6d   :  { %v1496_v63 = vadd.f32 -1.0, %v628_v62 }
 0xc6f   :  { %v630_v0 = vsel %vm70_vm1, %v1496_v63, %v1841_v61 }
 0xc70   :  { %632 = vrot.lane.b32.xlu1 %v630_v0, %s1942_s1  ;;  %v636_v6 = vmul.f32 %v630_v0, %v539_v46 }
 0xce2   :  { %v633_v4 = vpop.permute.xlu1 %632 }
 0xce3   :  { %v635_v5 = vmul.f32 %v633_v4, %v630_v0 }
 0xce5   :  { %638 = vrot.lane.b32.xlu1 %v635_v5, %s1943_s3 }
 0xd57   :  { %v639_v8 = vpop.permute.xlu1 %638 }
 0xd58   :  { %v641_v12 = vadd.f32 %v639_v8, %v636_v6 }
 0xd5a   :  { %1842 = vtanh.f32 %v641_v12 }
 0xd64   :  { %v1843_v13 = vpop.eup %1842 }
 0xd65   :  { %644 = vrot.lane.b32.xlu0 %v1843_v13, %s1942_s1 }
 0xd69   :  { %122 = vperm.xlu0 %1809, %v2062_v9  }
 0xd6d   :  { %1810 = vset.pattern.permute.xlu0 %v1949_v37 }
 0xdd7   :  { %v645_v16 = vpop.permute.xlu0 %644 }
 0xdd8   :  { %v647_v17 = vmul.f32 %v645_v16, %v630_v0 }
 0xdda   :  { %649 = vrot.lane.b32.xlu1 %v647_v17, %s1942_s1 }
 0xde8   :  { %v123_v19 = vpop.permute.xlu0 %122 }
 0xde9   :  { %v125_v20 = vmul.f32 %v2085_v11, %v123_v19 }
 0xdeb   :  { %v126_v21 = vadd.f32 %v2091_v14, %v125_v20 }
 0xe4c   :  { %v650_v18 = vpop.permute.xlu1 %649 }
 0xe4d   :  { %1647 = vmatmul.mubr.msk.f32.vlgmr.msra.gmra.mrb[4].mxu1 %vm139_vm2, %v650_v18 }
 0xe4e   :  { %1759 = vmatpush3.bf16.msra.mxu1 %v2054_v7  ;;  %1668 = vmatprep.mubr.msk.f32.mxu1 %vm1939_vm0, %v1940_v2 }
 0xe4f   :  { %1760 = vmatprep.subr.bf16.mxu1 %v1938_v1 }
 0xe52   :  { %1762 = vmatpush3.bf16.msra.mxu1 %v2066_v10 }
 0xe53   :  { %1769 = vmatprep.subr.bf16.mxu1 %v1938_v1 }
 0xf20   :  { %v719_v22 = vpop.f32.mrb[4].mxu1 }
 0xf21   :  { %v723_v24 = vadd.f32 %v719_v22, %v126_v21  ;;  %v1648_v25 = vpop.f32.mrb[5].mxu1  ;;  %v955_v22 = vld [vmem:[#allocation3] sm:$0xff] }
 0xf22   :  { %v957_v25 = vld [vmem:[#allocation3 + $0x10] sm:$0xff] }
 0xf23   :  { %v1498_v26 = vmul.f32 -1.442695, %v723_v24  ;;  %v956_v24 = vld [vmem:[#allocation3 + $0x8] sm:$0xff] }
 0xf25   :  { %1844 = vpow2.f32 %v1498_v26  ;;  %v1764_v26 = vpack.c.bf16 %v956_v24, %v955_v22 }
 0xf2f   :  { %v1845_v7 = vpop.eup %1844 }
 0xf30   :  { %v727_v27 = vadd.f32 1.0, %v1845_v7  ;;  %v958_v7 = vld [vmem:[#allocation3 + $0x18] sm:$0xff] }
 0xf32   :  { %1846 = vrcp.f32 %v727_v27  ;;  %v1767_v27 = vpack.c.bf16 %v958_v7, %v957_v25 }
 0xf3c   :  { %v1847_v28 = vpop.eup %1846 }
 0xf3d   :  { %v730_v29 = vmul.f32 2.0, %v1847_v28 }
 0xf3f   :  { %v1499_v30 = vadd.f32 -1.0, %v730_v29 }
 0xf41   :  { %v732_v10 = vsel %vm70_vm1, %v1499_v30, %v1847_v28 }
 0xf42   :  { %734 = vrot.lane.b32.xlu1 %v732_v10, %s1942_s1  ;;  %v738_v33 = vmul.f32 %v732_v10, %v641_v12 }
 0xfb4   :  { %v735_v31 = vpop.permute.xlu1 %734 }
 0xfb5   :  { %v737_v32 = vmul.f32 %v735_v31, %v732_v10  ;;  %v1506_v31 = vld [vmem:[%s2286_s4] ss:$0 sm:$0xff] }
 0xfb7   :  { %740 = vrot.lane.b32.xlu1 %v737_v32, %s1943_s3 }
0x1029   :  { %v741_v34 = vpop.permute.xlu1 %740 }
0x102a   :  { %v743_v35 = vadd.f32 %v741_v34, %v738_v33  ;;  %v1507_v33 = vld [vmem:[%s2288_s6] ss:$0 sm:$0xff] }
0x102c   :  { %1848 = vtanh.f32 %v743_v35 }
0x1036   :  { %v1849_v36 = vpop.eup %1848 }
0x1037   :  { %746 = vrot.lane.b32.xlu0 %v1849_v36, %s1942_s1 }
0x103b   :  { %128 = vperm.xlu0 %1810, %v2062_v9  }
0x103f   :  { %1811 = vset.pattern.permute.xlu0 %v1950_v60  ;;  %v1512_v60 = vld [vmem:[%s2290_s8] ss:$0 sm:$0xff] }
0x10a9   :  { %v747_v38 = vpop.permute.xlu0 %746 }
0x10aa   :  { %v749_v39 = vmul.f32 %v747_v38, %v732_v10 }
0x10ac   :  { %751 = vrot.lane.b32.xlu1 %v749_v39, %s1942_s1 }
0x10ba   :  { %v129_v41 = vpop.permute.xlu0 %128 }
0x10bb   :  { %v131_v42 = vmul.f32 %v2085_v11, %v129_v41 }
0x10bd   :  { %v132_v43 = vadd.f32 %v2091_v14, %v131_v42 }
0x111e   :  { %v752_v40 = vpop.permute.xlu1 %751 }
0x111f   :  { %1658 = vmatmul.mubr.msk.f32.vlgmr.msra.gmra.mrb[6].mxu0 %vm139_vm2, %v752_v40 }
0x1120   :  { %1679 = vmatprep.mubr.msk.f32.mxu0 %vm1939_vm0, %v1940_v2  ;;  %1765 = vmatpush3.bf16.msra.mxu0 %v1764_v26 }
0x1121   :  { %1766 = vmatprep.subr.bf16.mxu0 %v1938_v1 }
0x1124   :  { %1768 = vmatpush3.bf16.msra.mxu0 %v1767_v27 }
0x1125   :  { %1775 = vmatprep.subr.bf16.mxu0 %v1938_v1 }
0x11f2   :  { %v821_v44 = vpop.f32.mrb[6].mxu0 }
0x11f3   :  { %v825_v45 = vadd.f32 %v821_v44, %v132_v43  ;;  %v1659_v46 = vpop.f32.mrb[7].mxu0 }
0x11f5   :  { %v1501_v47 = vmul.f32 -1.442695, %v825_v45 }
0x11f7   :  { %1850 = vpow2.f32 %v1501_v47 }
0x1201   :  { %v1851_v48 = vpop.eup %1850 }
0x1202   :  { %v829_v49 = vadd.f32 1.0, %v1851_v48 }
0x1204   :  { %1852 = vrcp.f32 %v829_v49 }
0x120e   :  { %v1853_v50 = vpop.eup %1852 }
0x120f   :  { %v832_v51 = vmul.f32 2.0, %v1853_v50 }
0x1211   :  { %v1502_v52 = vadd.f32 -1.0, %v832_v51  ;;  %v961_v51 = vld [vmem:[#allocation5 + $0x8] sm:$0xff] }
0x1213   :  { %v834_v53 = vsel %vm70_vm1, %v1502_v52, %v1853_v50  ;;  %v960_v50 = vld [vmem:[#allocation5] sm:$0xff]  ;;  %v962_v52 = vld [vmem:[#allocation5 + $0x10] sm:$0xff] }
0x1214   :  { %836 = vrot.lane.b32.xlu1 %v834_v53, %s1942_s1  ;;  %v840_v56 = vmul.f32 %v834_v53, %v743_v35 }
0x1286   :  { %v837_v54 = vpop.permute.xlu1 %836 }
0x1287   :  { %v839_v55 = vmul.f32 %v837_v54, %v834_v53  ;;  %v963_v54 = vld [vmem:[#allocation5 + $0x18] sm:$0xff] }
0x1289   :  { %842 = vrot.lane.b32.xlu1 %v839_v55, %s1943_s3  ;;  %v1773_v55 = vpack.c.bf16 %v963_v54, %v962_v52 }
0x12fb   :  { %v843_v57 = vpop.permute.xlu1 %842 }
0x12fc   :  { %v845_v58 = vadd.f32 %v843_v57, %v840_v56 }
0x12fe   :  { %1854 = vtanh.f32 %v845_v58 }
0x1308   :  { %v1855_v59 = vpop.eup %1854 }
0x1309   :  { %848 = vrot.lane.b32.xlu0 %v1855_v59, %s1942_s1 }
0x130d   :  { %134 = vperm.xlu0 %1811, %v2062_v9  }
0x1311   :  { %1813 = vset.pattern.permute.xlu0 %v1941_v3 }
0x137b   :  { %v849_v61 = vpop.permute.xlu0 %848 }
0x137c   :  { %v851_v62 = vmul.f32 %v849_v61, %v834_v53  ;;  %v1770_v53 = vpack.c.bf16 %v961_v51, %v960_v50 }
0x137e   :  { %853 = vrot.lane.b32.xlu1 %v851_v62, %s1942_s1 }
0x138c   :  { %v135_v0 = vpop.permute.xlu0 %134 }
0x138d   :  { %v137_v4 = vmul.f32 %v2085_v11, %v135_v0  ;;  %v971_v32 = vmul.f32 %v1506_v31, %v135_v0 }
0x138f   :  { %v138_v5 = vadd.f32 %v2091_v14, %v137_v4  ;;  %v978_v34 = vadd.f32 %v1507_v33, %v971_v32 }
0x13f0   :  { %v854_v63 = vpop.permute.xlu1 %853 }
0x13f1   :  { %1669 = vmatmul.mubr.msk.f32.vlgmr.msra.gmra.mrb[6].mxu1 %vm139_vm2, %v854_v63 }
0x13f2   :  { %1690 = vmatprep.mubr.msk.f32.mxu1 %vm1939_vm0, %v1940_v2  ;;  %1771 = vmatpush3.bf16.msra.mxu1 %v1770_v53 }
0x13f3   :  { %1772 = vmatprep.subr.bf16.mxu1 %v1938_v1 }
0x13f6   :  { %1774 = vmatpush3.bf16.msra.mxu1 %v1773_v55 }
0x13f7   :  { %1781 = vmatprep.subr.bf16.mxu1 %v1938_v1 }
0x14c4   :  { %v923_v6 = vpop.f32.mrb[6].mxu1 }
0x14c5   :  { %v927_v8 = vadd.f32 %v923_v6, %v138_v5  ;;  %v1670_v9 = vpop.f32.mrb[7].mxu1 }
0x14c7   :  { %v1504_v12 = vmul.f32 -1.442695, %v927_v8 }
0x14c9   :  { %1856 = vpow2.f32 %v1504_v12 }
0x14d3   :  { %v1857_v3 = vpop.eup %1856 }
0x14d4   :  { %v931_v13 = vadd.f32 1.0, %v1857_v3 }
0x14d6   :  { %1858 = vrcp.f32 %v931_v13 }
0x14e0   :  { %v1859_v15 = vpop.eup %1858 }
0x14e1   :  { %v934_v16 = vmul.f32 2.0, %v1859_v15 }
0x14e3   :  { %v1505_v17 = vadd.f32 -1.0, %v934_v16 }
0x14e5   :  { %v936_v18 = vsel %vm70_vm1, %v1505_v17, %v1859_v15 }
0x14e6   :  { %938 = vrot.lane.b32.xlu1 %v936_v18, %s1942_s1  ;;  %v942_v14 = vmul.f32 %v936_v18, %v845_v58 }
0x1558   :  { %v939_v19 = vpop.permute.xlu1 %938 }
0x1559   :  { %v941_v11 = vmul.f32 %v939_v19, %v936_v18 }
0x155b   :  { %944 = vrot.lane.b32.xlu1 %v941_v11, %s1943_s3 }
0x15cd   :  { %v945_v20 = vpop.permute.xlu1 %944 }
0x15ce   :  { %v947_v21 = vadd.f32 %v945_v20, %v942_v14 }
0x15d0   :  { %1860 = vtanh.f32 %v947_v21 }
0x15da   :  { %v1861_v28 = vpop.eup %1860 }
0x15db   :  { %950 = vrot.lane.b32.xlu0 %v1861_v28, %s1942_s1 }
0x164d   :  { %v951_v29 = vpop.permute.xlu0 %950 }
0x164e   :  { %v953_v30 = vmul.f32 %v951_v29, %v936_v18 }
0x1650   :  { %980 = vrot.lane.b32.xlu1 %v953_v30, %s1942_s1 }
0x16c2   :  { %v981_v10 = vpop.permute.xlu1 %980 }
0x16c3   :  { %1680 = vmatmul.mubr.msk.f32.vlgmr.msra.gmra.mrb[8].mxu0 %vm139_vm2, %v981_v10 }
0x16c4   :  { %1701 = vmatprep.mubr.msk.f32.mxu0 %vm1939_vm0, %v1940_v2  ;;  %1777 = vmatpush3.bf16.msra.mxu0 %v1770_v53 }
0x16c5   :  { %1778 = vmatprep.subr.bf16.mxu0 %v1938_v1 }
0x16c8   :  { %1780 = vmatpush3.bf16.msra.mxu0 %v1773_v55 }
0x1796   :  { %v1050_v35 = vpop.f32.mrb[8].mxu0 }
0x1797   :  { %v1054_v36 = vadd.f32 %v1050_v35, %v978_v34  ;;  %v1681_v37 = vpop.f32.mrb[9].mxu0 }
0x1799   :  { %v1509_v38 = vmul.f32 -1.442695, %v1054_v36 }
0x179b   :  { %1862 = vpow2.f32 %v1509_v38 }
0x17a5   :  { %v1863_v39 = vpop.eup %1862 }
0x17a6   :  { %v1058_v40 = vadd.f32 1.0, %v1863_v39 }
0x17a8   :  { %1864 = vrcp.f32 %v1058_v40 }
0x17b2   :  { %v1865_v41 = vpop.eup %1864 }
0x17b3   :  { %v1061_v42 = vmul.f32 2.0, %v1865_v41 }
0x17b5   :  { %v1510_v43 = vadd.f32 -1.0, %v1061_v42 }
0x17b7   :  { %v1063_v44 = vsel %vm70_vm1, %v1510_v43, %v1865_v41 }
0x17b8   :  { %1065 = vrot.lane.b32.xlu0 %v1063_v44, %s1942_s1  ;;  %v1069_v47 = vmul.f32 %v1063_v44, %v947_v21 }
0x182a   :  { %v1066_v45 = vpop.permute.xlu0 %1065 }
0x182b   :  { %v1068_v46 = vmul.f32 %v1066_v45, %v1063_v44 }
0x182d   :  { %1071 = vrot.lane.b32.xlu1 %v1068_v46, %s1943_s3  ;;  %v1521_v46 = vld [vmem:[%s2291_s9] ss:$0 sm:$0xff] }
0x189f   :  { %v1072_v48 = vpop.permute.xlu1 %1071 }
0x18a0   :  { %v1074_v49 = vadd.f32 %v1072_v48, %v1069_v47 }
0x18a2   :  { %1866 = vtanh.f32 %v1074_v49 }
0x18ac   :  { %v1867_v56 = vpop.eup %1866 }
0x18ad   :  { %1077 = vrot.lane.b32.xlu0 %v1867_v56, %s1942_s1 }
0x191f   :  { %v1078_v57 = vpop.permute.xlu0 %1077 }
0x1920   :  { %v2228_v58 = vmul.f32 %v1078_v57, %v1063_v44 }
0x1922   :  { %1082 = vrot.lane.b32.xlu1 %v2228_v58, %s1942_s1 }
0x1994   :  { %v1083_v59 = vpop.permute.xlu1 %1082 }
0x1995   :  { %1691 = vmatmul.mubr.msk.f32.vlgmr.msra.gmra.mrb[8].mxu1 %vm139_vm2, %v1083_v59 }
0x1996   :  { %1783 = vmatpush3.bf16.msra.mxu1 %v1770_v53  ;;  %1712 = vmatprep.mubr.msk.f32.mxu1 %vm1939_vm0, %v1940_v2 }
0x1997   :  { %1784 = vmatprep.subr.bf16.mxu1 %v1938_v1 }
0x199a   :  { %1786 = vmatpush3.bf16.msra.mxu1 %v1773_v55 }
0x1a68   :  { %v1152_v61 = vpop.f32.mrb[8].mxu1 }
0x1a69   :  { %v1162_v62 = vadd.f32 %v1512_v60, %v1152_v61  ;;  %v1692_v63 = vpop.f32.mrb[9].mxu1 }
0x1a6b   :  { %v1513_v0 = vmul.f32 -1.442695, %v1162_v62 }
0x1a6d   :  { %1868 = vpow2.f32 %v1513_v0 }
0x1a77   :  { %v1869_v4 = vpop.eup %1868 }
0x1a78   :  { %v1166_v5 = vadd.f32 1.0, %v1869_v4 }
0x1a7a   :  { %1870 = vrcp.f32 %v1166_v5 }
0x1a84   :  { %v1871_v6 = vpop.eup %1870 }
0x1a85   :  { %v1169_v8 = vmul.f32 2.0, %v1871_v6 }
0x1a87   :  { %v1514_v9 = vadd.f32 -1.0, %v1169_v8 }
0x1a89   :  { %v1171_v2 = vsel %vm70_vm1, %v1514_v9, %v1871_v6  ;;  %v1522_v6 = vld [vmem:[#allocation2] ss:$0 sm:$0xff] }
0x1a8a   :  { %1173 = vrot.lane.b32.xlu0 %v1171_v2, %s1942_s1  ;;  %v1177_v3 = vmul.f32 %v1171_v2, %v1074_v49 }
0x1afc   :  { %v1174_v1 = vpop.permute.xlu0 %1173 }
0x1afd   :  { %v1176_v12 = vmul.f32 %v1174_v1, %v1171_v2 }
0x1aff   :  { %1179 = vrot.lane.b32.xlu1 %v1176_v12, %s1943_s3 }
0x1b71   :  { %v1180_v13 = vpop.permute.xlu1 %1179 }
0x1b72   :  { %v1182_v15 = vadd.f32 %v1180_v13, %v1177_v3 }
0x1b74   :  { %1872 = vtanh.f32 %v1182_v15 }
0x1b7e   :  { %v1873_v16 = vpop.eup %1872 }
0x1b7f   :  { %1185 = vrot.lane.b32.xlu0 %v1873_v16, %s1942_s1 }
0x1bf1   :  { %v1186_v17 = vpop.permute.xlu0 %1185 }
0x1bf2   :  { %v2244_v18 = vmul.f32 %v1186_v17, %v1171_v2 }
0x1bf4   :  { %1190 = vrot.lane.b32.xlu1 %v2244_v18, %s1942_s1 }
0x1c66   :  { %v1191_v19 = vpop.permute.xlu1 %1190 }
0x1c67   :  { %1702 = vmatmul.mubr.msk.f32.vlgmr.msra.gmra.mrb[10].mxu0 %vm139_vm2, %v1191_v19 }
0x1d3a   :  { %v1260_v11 = vpop.f32.mrb[10].mxu0 }
0x1d3b   :  { %v1264_v14 = vadd.f32 %v1512_v60, %v1260_v11  ;;  %v1703_v20 = vpop.f32.mrb[11].mxu0 }
0x1d3d   :  { %v1516_v21 = vmul.f32 -1.442695, %v1264_v14 }
0x1d3f   :  { %1874 = vpow2.f32 %v1516_v21 }
0x1d49   :  { %v1875_v22 = vpop.eup %1874 }
0x1d4a   :  { %v1268_v24 = vadd.f32 1.0, %v1875_v22 }
0x1d4c   :  { %1876 = vrcp.f32 %v1268_v24 }
0x1d56   :  { %v1877_v25 = vpop.eup %1876 }
0x1d57   :  { %v1271_v26 = vmul.f32 2.0, %v1877_v25 }
0x1d59   :  { %v1517_v7 = vadd.f32 -1.0, %v1271_v26 }
0x1d5b   :  { %v1273_v27 = vsel %vm70_vm1, %v1517_v7, %v1877_v25 }
0x1d5c   :  { %1275 = vrot.lane.b32.xlu0 %v1273_v27, %s1942_s1  ;;  %v1279_v30 = vmul.f32 %v1273_v27, %v1182_v15 }
0x1dce   :  { %v1276_v28 = vpop.permute.xlu0 %1275 }
0x1dcf   :  { %v1278_v29 = vmul.f32 %v1276_v28, %v1273_v27 }
0x1dd1   :  { %1281 = vrot.lane.b32.xlu1 %v1278_v29, %s1943_s3 }
0x1e43   :  { %v1282_v10 = vpop.permute.xlu1 %1281 }
0x1e44   :  { %v1284_v31 = vadd.f32 %v1282_v10, %v1279_v30 }
0x1e46   :  { %1878 = vtanh.f32 %v1284_v31 }
0x1e50   :  { %v1879_v32 = vpop.eup %1878 }
0x1e51   :  { %1287 = vrot.lane.b32.xlu0 %v1879_v32, %s1942_s1 }
0x1ec3   :  { %v1288_v33 = vpop.permute.xlu0 %1287 }
0x1ec4   :  { %v1290_v34 = vmul.f32 %v1288_v33, %v1273_v27 }
0x1ec6   :  { %1292 = vrot.lane.b32.xlu1 %v1290_v34, %s1942_s1 }
0x1f38   :  { %v1293_v35 = vpop.permute.xlu1 %1292 }
0x1f39   :  { %1713 = vmatmul.mubr.msk.f32.vlgmr.msra.gmra.mrb[10].mxu1 %vm139_vm2, %v1293_v35 }
0x200c   :  { %v1362_v36 = vpop.f32.mrb[10].mxu1 }
0x200d   :  { %v1366_v37 = vadd.f32 %v1512_v60, %v1362_v36  ;;  %v1714_v38 = vpop.f32.mrb[11].mxu1 }
0x200f   :  { %v1519_v39 = vmul.f32 -1.442695, %v1366_v37 }
0x2011   :  { %1880 = vpow2.f32 %v1519_v39 }
0x201b   :  { %v1881_v40 = vpop.eup %1880 }
0x201c   :  { %v1370_v41 = vadd.f32 1.0, %v1881_v40 }
0x201e   :  { %1882 = vrcp.f32 %v1370_v41 }
0x2028   :  { %v1883_v42 = vpop.eup %1882 }
0x2029   :  { %v1373_v43 = vmul.f32 2.0, %v1883_v42 }
0x202b   :  { %v1520_v44 = vadd.f32 -1.0, %v1373_v43 }
0x202d   :  { %v1375_v45 = vsel %vm70_vm1, %v1520_v44, %v1883_v42 }
0x202e   :  { %1377 = vrot.lane.b32.xlu0 %v1375_v45, %s1942_s1  ;;  %v1381_v52 = vmul.f32 %v1375_v45, %v1284_v31 }
0x2032   :  { %1400 = vrot.lane.b32.xlu0 %v1521_v46, %s1942_s1 }
0x20a0   :  { %v1378_v47 = vpop.permute.xlu0 %1377 }
0x20a1   :  { %v1380_v48 = vmul.f32 %v1378_v47, %v1375_v45 }
0x20a3   :  { %1383 = vrot.lane.b32.xlu1 %v1380_v48, %s1943_s3 }
0x20a4   :  { %v1401_v49 = vpop.permute.xlu0 %1400 }
0x20a5   :  { %v1403_v50 = vmul.f32 %v1401_v49, %v2228_v58  ;;  %v1441_v51 = vmul.f32 %v1401_v49, %v1290_v34  ;;  %v1425_v58 = vmul.f32 %v1401_v49, %v2244_v18 }
0x20a7   :  { %1405 = vrot.lane.b32.xlu0 %v1403_v50, %s1942_s1 }
0x20ab   :  { %1443 = vrot.lane.b32.xlu0 %v1441_v51, %s1942_s1 }
0x2115   :  { %v1384_v53 = vpop.permute.xlu1 %1383 }
0x2116   :  { %v1386_v54 = vadd.f32 %v1384_v53, %v1381_v52 }
0x2118   :  { %1884 = vtanh.f32 %v1386_v54 }
0x2119   :  { %v1406_v55 = vpop.permute.xlu0 %1405 }
0x211a   :  { %v1408_v56 = vsel %vm139_vm2, %v1406_v55, 0.0 }
0x211b   :  { %1409 = vadd.xlane.f32.xlu0 %v1408_v56 }
0x211d   :  { %v1444_v57 = vpop.permute.xlu0 %1443 }
0x211e   :  { %v1446_v59 = vsel %vm139_vm2, %v1444_v57, 0.0 }
0x211f   :  { %1447 = vadd.xlane.f32.xlu0 %v1446_v59 }
0x2122   :  { %v1885_v60 = vpop.eup %1884 }
0x2123   :  { %1389 = vrot.lane.b32.xlu1 %v1885_v60, %s1942_s1 }
0x2127   :  { %1427 = vrot.lane.b32.xlu1 %v1425_v58, %s1942_s1 }
0x2195   :  { %v1390_v61 = vpop.permute.xlu1 %1389 }
0x2196   :  { %v1392_v62 = vmul.f32 %v1390_v61, %v1375_v45 }
0x2198   :  { %v1457_v63 = vmul.f32 %v1401_v49, %v1392_v62 }
0x2199   :  { %v1428_v0 = vpop.permute.xlu1 %1427 }
0x219a   :  { %1459 = vrot.lane.b32.xlu1 %v1457_v63, %s1942_s1  ;;  %v1430_v4 = vsel %vm139_vm2, %v1428_v0, 0.0 }
0x21a8   :  { %v1410_v5 = vpop.xlane.xlu0 %1409 }
0x21a9   :  { %v1417_v8 = vadd.f32 %v1522_v6, %v1410_v5 }
0x21ac   :  { %v1448_v9 = vpop.xlane.xlu0 %1447 }
0x21ad   :  { %v1449_v2 = vadd.f32 %v1522_v6, %v1448_v9 }
0x21be   :  { %1431 = vadd.xlane.f32.xlu1 %v1430_v4 }
0x21cf   :  { %1421 = vperm.xlu1 %1812, %v1417_v8  }
0x21d3   :  { %1453 = vperm.xlu1 %1812, %v1449_v2  }
0x220c   :  { %v1460_v1 = vpop.permute.xlu1 %1459 }
0x220d   :  { %v1462_v12 = vsel %vm139_vm2, %v1460_v1, 0.0 }
0x220e   :  { %1463 = vadd.xlane.f32.xlu0 %v1462_v12 }
0x224b   :  { %v1432_v3 = vpop.xlane.xlu1 %1431 }
0x224c   :  { %v1433_v13 = vadd.f32 %v1522_v6, %v1432_v3 }
0x224e   :  { %1437 = vperm.xlu0 %1813, %v1433_v13  }
0x224f   :  { %v1422_v17 = vpop.permute.xlu1 %1421 }
0x2250   :  { %v1424_v19 = vsel %vm1418_vm3, %v1422_v17, 0.0 }
0x2253   :  { %v1454_v11 = vpop.permute.xlu1 %1453 }
0x229b   :  { %v1464_v15 = vpop.xlane.xlu0 %1463 }
0x229c   :  { %v1465_v16 = vadd.f32 %v1522_v6, %v1464_v15 }
0x229e   :  { %1469 = vperm.xlu1 %1812, %v1465_v16  }
0x22cd   :  { %v1438_v18 = vpop.permute.xlu0 %1437 }
0x22ce   :  { %v1440_v14 = vsel %vm1434_vm4, %v1438_v18, %v1424_v19 }
0x22cf   :  { %v1456_v20 = vsel %vm1450_vm5, %v1454_v11, %v1440_v14 }
0x231d   :  { %v1470_v21 = vpop.permute.xlu1 %1469 }
0x231e   :  { %v1472_v22 = vsel %vm1466_vm6, %v1470_v21, %v1456_v20 }
0x231f   :  { %1474 = vst.msk [vmem:[%s2293_s11] sm:$0xff] %vm1473_vm7, %v1472_v22 }
0x2320   :  { %1479 = vsyncpa [#allocation4], 1 }
0x2321   :  { %1480 = vsyncpa [#allocation6], 1 }

</bundles_post_ra>
